<compile_context>
chip_gen: v7x
topology: tpu7x:2x2x1
jax: 0.10.0
libtpu: 0.0.40
codegen_flags: <defaults>
</compile_context>

<pallas_src>
import jax
import jax.numpy as jnp
from jax import lax
from jax.experimental import pallas as pl
from jax.experimental.pallas import tpu as pltpu

# ---- small deterministic config (configs.n_inter=32, configs.n_rl=16) ----
T = 8          # sequence length
B = 8          # batch size
N_RL = 16      # configs.n_rl
H = 32         # configs.n_inter (GRU hidden per direction)
G = 2 * H      # fused (bidirectional) gate width for layer 0
TB = T * B
FEAT = 1 + N_RL + 2       # iou + evi + loc = 19 folded input features per direction
ACT_W = 2 * FEAT + 2      # fwd feats | rev feats | final_loc  -> 40 lanes

# ---- f32 weight-slab row layout (lane width 6H = 192, all offsets 8-aligned) ----
R_W0 = 0          # [0:40)   folded+interleaved layer-0 input weights (38 rows used)
R_W1 = 40         # [40:104) layer-1 block input weights -> [Pf | Pb]
R_W1B = 104       # [104:136) layer-1 backward input weights [fwd half | bwd half]
R_B0 = 136        # interleaved layer-0 gate bias            (192 lanes)
R_B1F = 137       # layer-1 fwd gate bias                    (96 lanes)
R_B1B = 138       # layer-1 bwd gate bias                    (96 lanes)
R_BHH0N = 139     # layer-0 b_hn  [fwd | bwd]                (64 lanes)
R_BHH1FN = 140    # layer-1 fwd b_hn                         (32 lanes)
R_BHH1BN = 141    # layer-1 bwd b_hn                         (32 lanes)
R_BHEAD = 142     # folded fc bias (b_loc@w_fc[:64] + b_fc)  (64 lanes)
R_WOUT = 143      # out_linear weight row (64 lanes) + bias at lane 64
R_WFCLOC = 144    # [144:146) folded loc_ffn∘fc weights (2 rows x 64 lanes)
R_WFC_H1F = 152   # [152:184) fc weights for h1f
R_WFC_H1B = 184   # [184:216) fc weights for h1b
W_ROWS = 216


def _sigmoid(x):
    return 1.0 / (1.0 + jnp.exp(-x))


def _sig(x):
    # sigmoid via tanh: one EUP op, no exp/divide on the serial recurrence path.
    return jnp.tanh(x * 0.5) * 0.5 + 0.5


def manager_kernel(act_ref, w_ref, whh_ref, out_ref):
    f32 = jnp.float32
    bf16 = jnp.bfloat16

    def dot(a, b):
        return jnp.dot(a, b, preferred_element_type=f32)

    # ---------- GRU cells (PyTorch gate order r|z|n; b_ih and b_hh[r,z] pre-folded) ----
    def cell_h0(gi_s, bhhn, g):
        # First step of a direction (h == 0): W_hh matmul vanishes; b_hn stays
        # (it is multiplied by r inside the n gate).
        rz = _sig(gi_s[:, 0:2 * g])
        r = rz[:, 0:g]
        z = rz[:, g:2 * g]
        n = jnp.tanh(gi_s[:, 2 * g:3 * g] + r * bhhn)
        return (1.0 - z) * n

    def cell(gi_s, h, w_rz, w_n, bhhn, g):
        hb = h.astype(bf16)                               # serial-path matmul in bf16
        gh_rz = dot(hb, w_rz)                             # [B, 2g]
        gh_n = dot(hb, w_n)                               # [B, g]   (overlaps rz sigmoid)
        rz = _sig(gi_s[:, 0:2 * g] + gh_rz)               # single EUP op for all r|z
        r = rz[:, 0:g]
        z = rz[:, g:2 * g]
        n = jnp.tanh(gi_s[:, 2 * g:3 * g] + r * (gh_n + bhhn))
        return (1.0 - z) * n + z * h

    # ---------- recurrent weights (bf16), sliced once off the serial path ----------
    whh = whh_ref[...]                                    # [3H, 6H] bf16
    whh0_rz = whh[0:2 * H, 0:4 * H]                       # [2H, 4H]
    whh0_n = whh[0:2 * H, 4 * H:6 * H]                    # [2H, 2H]
    whh1_rz = whh[2 * H:3 * H, 0:2 * H]                   # [H, 2H]
    whh1_n = whh[2 * H:3 * H, 2 * H:3 * H]                # [H, H]

    bhh0n = w_ref[R_BHH0N:R_BHH0N + 1, 0:2 * H]           # [1, 2H]
    bhh1fn = w_ref[R_BHH1FN:R_BHH1FN + 1, 0:H]            # [1, H]
    bhh1bn = w_ref[R_BHH1BN:R_BHH1BN + 1, 0:H]            # [1, H]

    # ---------- layer 0: fused bidirectional input gates, one K=40 matmul ----------
    # act lanes 38:40 only carry final_loc; matching weight rows are zero.
    act = act_ref[...]                                    # [TB, 40]
    gi0 = dot(act, w_ref[R_W0:R_W0 + ACT_W, :]) + w_ref[R_B0:R_B0 + 1, :]   # [TB, 6H]

    # fused bidirectional recurrence, fully unrolled; h_hist[s] = [h0f(t=s) | h0b(t=T-1-s)]
    h = cell_h0(gi0[0:B, :], bhh0n, G)
    h_hist = [h]
    for s in range(1, T):
        h = cell(gi0[s * B:(s + 1) * B, :], h, whh0_rz, whh0_n, bhh0n, G)
        h_hist.append(h)

    # ---------- layer 1, forward direction (only final hidden consumed downstream) ----
    h_stack = jnp.concatenate(h_hist, axis=0)             # [TB, 2H]
    P = dot(h_stack, w_ref[R_W1:R_W1 + 2 * H, :])         # [TB, 6H] = [Pf | Pb]
    b1f = w_ref[R_B1F:R_B1F + 1, 0:3 * H]                 # [1, 3H]

    def gi1(u):
        # x1(u) gates = h0f(u)@W (block u of Pf) + h0b(u)@W (block T-1-u of Pb) + bias
        return (P[u * B:(u + 1) * B, 0:3 * H]
                + P[(T - 1 - u) * B:(T - u) * B, 3 * H:6 * H] + b1f)

    h1f = cell_h0(gi1(0), bhh1fn, H)
    for u in range(1, T):
        h1f = cell(gi1(u), h1f, whh1_rz, whh1_n, bhh1fn, H)

    # ---------- layer 1, backward direction ----------
    # Only f1[-1] feeds the head and the backward pass starts at t=T-1 from a zero state,
    # so it is exactly one zero-state GRU cell.
    # TODO(synk): this shortcut is only valid while the head consumes f1[-1] alone.
    h0f_last = h_hist[T - 1][:, 0:H]
    h0b_last = h_hist[0][:, H:2 * H]
    b1b = w_ref[R_B1B:R_B1B + 1, 0:3 * H]
    gi1b = (dot(h0f_last, w_ref[R_W1B:R_W1B + H, 0:3 * H])
            + dot(h0b_last, w_ref[R_W1B:R_W1B + H, 3 * H:6 * H]) + b1b)    # [B, 3H]
    h1b = cell_h0(gi1b, bhh1bn, H)

    # ---------- choice head: fc(cat(loc_ffn(final_loc), f1[-1])) -> relu -> out ----------
    # loc_ffn is folded into fc host-side (wfc_loc = w_loc @ w_fc[:64]); K=2 stays on VPU.
    floc = act_ref[0:B, 2 * FEAT:2 * FEAT + 2]            # [B, 2]
    fc = (floc[:, 0:1] * w_ref[R_WFCLOC:R_WFCLOC + 1, 0:2 * H]
          + floc[:, 1:2] * w_ref[R_WFCLOC + 1:R_WFCLOC + 2, 0:2 * H]
          + dot(h1f, w_ref[R_WFC_H1F:R_WFC_H1F + H, 0:2 * H])
          + dot(h1b, w_ref[R_WFC_H1B:R_WFC_H1B + H, 0:2 * H])
          + w_ref[R_BHEAD:R_BHEAD + 1, 0:2 * H])          # [B, 2H]
    acth = jnp.maximum(fc, 0.0)   # TODO(synk): Dropout is identity in eval mode.
    w_out_row = w_ref[R_WOUT:R_WOUT + 1, 0:2 * H]         # [1, 2H]
    b_out = w_ref[R_WOUT:R_WOUT + 1, 2 * H:2 * H + 1]     # [1, 1]
    out_ref[...] = jnp.sum(acth * w_out_row, axis=1, keepdims=True) + b_out


# ------------------------- host-side one-time weight folding & packing -------------------------
def pack_params(p):
    """Fold FFNs/biases into the GRU weights and pack everything into two slabs.

    Returns (w_slab [W_ROWS, 6H] f32, whh_slab [3H, 6H] bf16).  Run ONCE per model."""
    f32 = jnp.float32
    zH = jnp.zeros((H, H), f32)

    def fold_dir(wih, bih, bhh):
        # Fold iou/evi/loc FFN weights + biases and b_hh[r,z] into the GRU input path.
        w = jnp.concatenate([p["w_iou"] @ wih[0:32, :],
                             p["w_evi"] @ wih[32:64, :],
                             p["w_loc"] @ wih[64:128, :]], axis=0)              # [19, 3H]
        b = (p["b_iou"] @ wih[0:32, :] + p["b_evi"] @ wih[32:64, :]
             + p["b_loc"] @ wih[64:128, :] + bih
             + jnp.concatenate([bhh[:, 0:2 * H], jnp.zeros((1, H), f32)], axis=1))
        return w, b

    def interleave(m, fwd):
        # [rows, 3H] (r|z|n) -> [rows, 6H] in gate-major layout [r_f r_b|z_f z_b|n_f n_b]
        zeros = jnp.zeros((m.shape[0], H), f32)
        r, zg, n = m[:, 0:H], m[:, H:2 * H], m[:, 2 * H:3 * H]
        if fwd:
            return jnp.concatenate([r, zeros, zg, zeros, n, zeros], axis=1)
        return jnp.concatenate([zeros, r, zeros, zg, zeros, n], axis=1)

    wf_fold, bf_fold = fold_dir(p["wih0f"], p["bih0f"], p["bhh0f"])
    wb_fold, bb_fold = fold_dir(p["wih0b"], p["bih0b"], p["bhh0b"])
    W0_il = jnp.concatenate([interleave(wf_fold, True),
                             interleave(wb_fold, False)], axis=0)               # [38, 6H]
    b0_il = interleave(bf_fold, True) + interleave(bb_fold, False)              # [1, 6H]

    # layer-1 forward input weights as a block mapping h_stack -> [Pf | Pb]
    w1f = p["wih1f"]                                                            # [2H, 3H]
    W1_il = jnp.zeros((2 * H, 6 * H), f32)
    W1_il = W1_il.at[0:H, 0:3 * H].set(w1f[0:H, :])
    W1_il = W1_il.at[H:2 * H, 3 * H:6 * H].set(w1f[H:2 * H, :])

    def fold_l1_bias(bih, bhh):
        return jnp.concatenate([bih[:, 0:2 * H] + bhh[:, 0:2 * H],
                                bih[:, 2 * H:3 * H]], axis=1)

    b1f = fold_l1_bias(p["bih1f"], p["bhh1f"])
    b1b = fold_l1_bias(p["bih1b"], p["bhh1b"])
    bhh0n = jnp.concatenate([p["bhh0f"][:, 2 * H:], p["bhh0b"][:, 2 * H:]], axis=1)
    bhh1fn = p["bhh1f"][:, 2 * H:]
    bhh1bn = p["bhh1b"][:, 2 * H:]

    # head folds: loc_ffn composed with fc
    wfc = p["w_fc"]                                                             # [64+2H, 2H]
    wfc_loc = p["w_loc"] @ wfc[0:64, :]                                         # [2, 2H]
    b_head = p["b_loc"] @ wfc[0:64, :] + p["b_fc"]                              # [1, 2H]

    w = jnp.zeros((W_ROWS, 6 * H), f32)
    w = w.at[R_W0:R_W0 + 2 * FEAT, :].set(W0_il)
    w = w.at[R_W1:R_W1 + 2 * H, :].set(W1_il)
    w = w.at[R_W1B:R_W1B + H, 0:3 * H].set(p["wih1b"][0:H, :])
    w = w.at[R_W1B:R_W1B + H, 3 * H:6 * H].set(p["wih1b"][H:2 * H, :])
    w = w.at[R_B0, :].set(b0_il[0])
    w = w.at[R_B1F, 0:3 * H].set(b1f[0])
    w = w.at[R_B1B, 0:3 * H].set(b1b[0])
    w = w.at[R_BHH0N, 0:2 * H].set(bhh0n[0])
    w = w.at[R_BHH1FN, 0:H].set(bhh1fn[0])
    w = w.at[R_BHH1BN, 0:H].set(bhh1bn[0])
    w = w.at[R_BHEAD, 0:2 * H].set(b_head[0])
    w = w.at[R_WOUT, 0:2 * H].set(p["w_out"][:, 0])
    w = w.at[R_WOUT, 2 * H].set(p["b_out"][0, 0])
    w = w.at[R_WFCLOC:R_WFCLOC + 2, 0:2 * H].set(wfc_loc)
    w = w.at[R_WFC_H1F:R_WFC_H1F + H, 0:2 * H].set(wfc[64:64 + H, :])
    w = w.at[R_WFC_H1B:R_WFC_H1B + H, 0:2 * H].set(wfc[64 + H:64 + 2 * H, :])

    # bf16 recurrent-weight slab: block-diagonal gate-major layer-0 W_hh + layer-1 fwd W_hh
    wfh, wbh = p["whh0f"], p["whh0b"]
    whh0c = jnp.concatenate([
        jnp.concatenate([wfh[:, 0:H], zH, wfh[:, H:2 * H], zH, wfh[:, 2 * H:3 * H], zH], axis=1),
        jnp.concatenate([zH, wbh[:, 0:H], zH, wbh[:, H:2 * H], zH, wbh[:, 2 * H:3 * H]], axis=1),
    ], axis=0)                                                                  # [2H, 6H]
    whh = jnp.zeros((3 * H, 6 * H), f32)
    whh = whh.at[0:2 * H, :].set(whh0c)
    whh = whh.at[2 * H:3 * H, 0:3 * H].set(p["whh1f"])
    return w, whh.astype(jnp.bfloat16)


@jax.jit
def manager_model2(iou_seq, evi_seq, loc_seq, final_loc, w_slab, whh_slab):
    Tn, Bn = iou_seq.shape
    assert (Tn, Bn) == (T, B)
    # activation slab: [fwd feats | T-block-reversed feats | final_loc (rows 0:B)]
    x = jnp.concatenate([iou_seq[..., None], evi_seq, loc_seq], axis=-1).astype(jnp.float32)
    act = jnp.concatenate([x, x[::-1]], axis=-1).reshape(TB, 2 * FEAT)          # [TB, 38]
    act = jnp.pad(act, ((0, 0), (0, ACT_W - 2 * FEAT)))
    act = act.at[0:B, 2 * FEAT:2 * FEAT + 2].set(final_loc.astype(jnp.float32))

    vmem = pl.BlockSpec(memory_space=pltpu.MemorySpace.VMEM)
    out = pl.pallas_call(
        manager_kernel,
        out_shape=jax.ShapeDtypeStruct((B, 1), jnp.float32),
        in_specs=[vmem, vmem, vmem],
        out_specs=vmem,
    )(act, w_slab, whh_slab)
    return out[:, 0]   # .squeeze(-1)


# ------------------------- deterministic parameter init -------------------------
def init_params(key):
    def lin(k, fan_in, fan_out):
        k1, k2 = jax.random.split(k)
        bound = 1.0 / jnp.sqrt(jnp.float32(fan_in))
        w = jax.random.uniform(k1, (fan_in, fan_out), jnp.float32, -bound, bound)
        b = jax.random.uniform(k2, (1, fan_out), jnp.float32, -bound, bound)
        return w, b

    def gru_dir(k, in_size):
        k1, k2, k3, k4 = jax.random.split(k, 4)
        bound = 1.0 / jnp.sqrt(jnp.float32(H))
        wih = jax.random.uniform(k1, (in_size, 3 * H), jnp.float32, -bound, bound)
        whh = jax.random.uniform(k2, (H, 3 * H), jnp.float32, -bound, bound)
        bih = jax.random.uniform(k3, (1, 3 * H), jnp.float32, -bound, bound)
        bhh = jax.random.uniform(k4, (1, 3 * H), jnp.float32, -bound, bound)
        return wih, whh, bih, bhh

    keys = jax.random.split(key, 9)
    p = {}
    p["w_iou"], p["b_iou"] = lin(keys[0], 1, 32)
    p["w_evi"], p["b_evi"] = lin(keys[1], N_RL, 32)
    p["w_loc"], p["b_loc"] = lin(keys[2], 2, 64)
    p["wih0f"], p["whh0f"], p["bih0f"], p["bhh0f"] = gru_dir(keys[3], 128)
    p["wih0b"], p["whh0b"], p["bih0b"], p["bhh0b"] = gru_dir(keys[4], 128)
    p["wih1f"], p["whh1f"], p["bih1f"], p["bhh1f"] = gru_dir(keys[5], 2 * H)
    p["wih1b"], p["whh1b"], p["bih1b"], p["bhh1b"] = gru_dir(keys[6], 2 * H)
    p["w_fc"], p["b_fc"] = lin(keys[7], 2 * H + 64, 2 * H)
    p["w_out"], p["b_out"] = lin(keys[8], 2 * H, 1)
    return p


# ------------------------- pure-JAX reference (for checking) -------------------------
def reference(iou_seq, evi_seq, loc_seq, final_loc, p):
    x = jnp.concatenate([
        iou_seq[..., None] @ p["w_iou"] + p["b_iou"],
        evi_seq @ p["w_evi"] + p["b_evi"],
        loc_seq @ p["w_loc"] + p["b_loc"],
    ], axis=-1)                                              # [T, B, 128]

    def run_dir(x_seq, wih, whh, bih, bhh, reverse):
        Hh = whh.shape[0]

        def cell(h, x_t):
            gi = x_t @ wih + bih
            gh = h @ whh + bhh
            r = _sigmoid(gi[:, :Hh] + gh[:, :Hh])
            z = _sigmoid(gi[:, Hh:2 * Hh] + gh[:, Hh:2 * Hh])
            n = jnp.tanh(gi[:, 2 * Hh:] + r * gh[:, 2 * Hh:])
            h_new = (1.0 - z) * n + z * h
            return h_new, h_new

        xs = x_seq[::-1] if reverse else x_seq
        h0 = jnp.zeros((x_seq.shape[1], Hh), jnp.float32)
        _, hs = lax.scan(cell, h0, xs)
        return hs[::-1] if reverse else hs

    h0f = run_dir(x, p["wih0f"], p["whh0f"], p["bih0f"], p["bhh0f"], False)
    h0b = run_dir(x, p["wih0b"], p["whh0b"], p["bih0b"], p["bhh0b"], True)
    x1 = jnp.concatenate([h0f, h0b], axis=-1)
    h1f = run_dir(x1, p["wih1f"], p["whh1f"], p["bih1f"], p["bhh1f"], False)
    h1b = run_dir(x1, p["wih1b"], p["whh1b"], p["bih1b"], p["bhh1b"], True)
    f1 = jnp.concatenate([h1f, h1b], axis=-1)

    floc = final_loc @ p["w_loc"] + p["b_loc"]
    cat = jnp.concatenate([floc, f1[-1]], axis=-1)
    fc_out = cat @ p["w_fc"] + p["b_fc"]
    out = jnp.maximum(fc_out, 0.0) @ p["w_out"] + p["b_out"]
    return out.squeeze(-1)


if __name__ == "__main__":
    key = jax.random.PRNGKey(0)
    kp, kd = jax.random.split(key)
    params = init_params(kp)

    # fold/pack weights ONCE, outside the per-call jitted path
    w_slab, whh_slab = pack_params(params)
    w_slab = jax.block_until_ready(w_slab)
    whh_slab = jax.block_until_ready(whh_slab)

    k1, k2, k3, k4 = jax.random.split(kd, 4)
    iou_seq = jax.random.uniform(k1, (T, B), jnp.float32)            # [T, B]
    evi_seq = jax.random.normal(k2, (T, B, N_RL), jnp.float32)       # [T, B, n_rl]
    loc_seq = jax.random.uniform(k3, (T, B, 2), jnp.float32)         # [T, B, 2]
    final_loc = jax.random.uniform(k4, (B, 2), jnp.float32)          # [B, 2]

    out = manager_model2(iou_seq, evi_seq, loc_seq, final_loc, w_slab, whh_slab)
    out = jax.block_until_ready(out)

    ref = reference(iou_seq, evi_seq, loc_seq, final_loc, params)
    assert out.shape == (B,), out.shape
    max_err = float(jnp.max(jnp.abs(out - ref)))
    assert max_err < 1e-2, f"kernel/reference mismatch: {max_err}"
    print("KERNEL_OK")
</pallas_src>

<mosaic_0001>
module attributes {stable_mosaic.version = 11 : i64} {
  func.func @manager_kernel(%arg0: memref<64x40xf32, #tpu.memory_space<vmem>>, %arg1: memref<216x192xf32, #tpu.memory_space<vmem>>, %arg2: memref<96x192xbf16, #tpu.memory_space<vmem>>, %arg3: memref<8x1xf32, #tpu.memory_space<vmem>>) attributes {dimension_semantics = [], scalar_prefetch = 0 : i64, scratch_operands = 0 : i64, tpu.core_type = #tpu.core_type<tc>} {
    %c0 = arith.constant 0 : index
    %c0_0 = arith.constant 0 : index
    %0 = vector.load %arg2[%c0, %c0_0] : memref<96x192xbf16, #tpu.memory_space<vmem>>, vector<96x192xbf16>
    %1 = vector.extract_strided_slice %0 {offsets = [0, 0], sizes = [64, 128], strides = [1, 1]} : vector<96x192xbf16> to vector<64x128xbf16>
    %2 = vector.extract_strided_slice %0 {offsets = [0, 128], sizes = [64, 64], strides = [1, 1]} : vector<96x192xbf16> to vector<64x64xbf16>
    %3 = vector.extract_strided_slice %0 {offsets = [64, 0], sizes = [32, 64], strides = [1, 1]} : vector<96x192xbf16> to vector<32x64xbf16>
    %4 = vector.extract_strided_slice %0 {offsets = [64, 64], sizes = [32, 32], strides = [1, 1]} : vector<96x192xbf16> to vector<32x32xbf16>
    %c139 = arith.constant 139 : index
    %c0_1 = arith.constant 0 : index
    %5 = vector.load %arg1[%c139, %c0_1] : memref<216x192xf32, #tpu.memory_space<vmem>>, vector<1x64xf32>
    %c140 = arith.constant 140 : index
    %c0_2 = arith.constant 0 : index
    %6 = vector.load %arg1[%c140, %c0_2] : memref<216x192xf32, #tpu.memory_space<vmem>>, vector<1x32xf32>
    %c141 = arith.constant 141 : index
    %c0_3 = arith.constant 0 : index
    %7 = vector.load %arg1[%c141, %c0_3] : memref<216x192xf32, #tpu.memory_space<vmem>>, vector<1x32xf32>
    %c0_4 = arith.constant 0 : index
    %c0_5 = arith.constant 0 : index
    %8 = vector.load %arg0[%c0_4, %c0_5] : memref<64x40xf32, #tpu.memory_space<vmem>>, vector<64x40xf32>
    %c0_6 = arith.constant 0 : index
    %c0_7 = arith.constant 0 : index
    %9 = vector.load %arg1[%c0_6, %c0_7] : memref<216x192xf32, #tpu.memory_space<vmem>>, vector<40x192xf32>
    %cst = arith.constant dense<0.000000e+00> : vector<64x192xf32>
    %10 = tpu.matmul %8, %9, %cst {dimension_numbers = #tpu.dot_dimension_numbers<[1], [0], [0], [1], [0, 0, 1, 1], [], []>} : vector<64x40xf32>, vector<40x192xf32>, vector<64x192xf32> -> vector<64x192xf32>
    %c136 = arith.constant 136 : index
    %c0_8 = arith.constant 0 : index
    %11 = vector.load %arg1[%c136, %c0_8] : memref<216x192xf32, #tpu.memory_space<vmem>>, vector<1x192xf32>
    %12 = vector.broadcast %11 : vector<1x192xf32> to vector<64x192xf32>
    %13 = arith.addf %10, %12 : vector<64x192xf32>
    %14 = vector.extract_strided_slice %13 {offsets = [0, 0], sizes = [8, 192], strides = [1, 1]} : vector<64x192xf32> to vector<8x192xf32>
    %15 = vector.extract_strided_slice %14 {offsets = [0, 0], sizes = [8, 128], strides = [1, 1]} : vector<8x192xf32> to vector<8x128xf32>
    %cst_9 = arith.constant 5.000000e-01 : f32
    %16 = vector.broadcast %cst_9 : f32 to vector<8x128xf32>
    %17 = arith.mulf %15, %16 : vector<8x128xf32>
    %18 = math.tanh %17 : vector<8x128xf32>
    %cst_10 = arith.constant 5.000000e-01 : f32
    %19 = vector.broadcast %cst_10 : f32 to vector<8x128xf32>
    %20 = arith.mulf %18, %19 : vector<8x128xf32>
    %cst_11 = arith.constant 5.000000e-01 : f32
    %21 = vector.broadcast %cst_11 : f32 to vector<8x128xf32>
    %22 = arith.addf %20, %21 : vector<8x128xf32>
    %23 = vector.extract_strided_slice %22 {offsets = [0, 0], sizes = [8, 64], strides = [1, 1]} : vector<8x128xf32> to vector<8x64xf32>
    %24 = vector.extract_strided_slice %22 {offsets = [0, 64], sizes = [8, 64], strides = [1, 1]} : vector<8x128xf32> to vector<8x64xf32>
    %25 = vector.extract_strided_slice %14 {offsets = [0, 128], sizes = [8, 64], strides = [1, 1]} : vector<8x192xf32> to vector<8x64xf32>
    %26 = vector.broadcast %5 : vector<1x64xf32> to vector<8x64xf32>
    %27 = arith.mulf %23, %26 : vector<8x64xf32>
    %28 = arith.addf %25, %27 : vector<8x64xf32>
    %29 = math.tanh %28 : vector<8x64xf32>
    %cst_12 = arith.constant 1.000000e+00 : f32
    %30 = vector.broadcast %cst_12 : f32 to vector<8x64xf32>
    %31 = arith.subf %30, %24 : vector<8x64xf32>
    %32 = arith.mulf %31, %29 : vector<8x64xf32>
    %33 = vector.extract_strided_slice %13 {offsets = [8, 0], sizes = [8, 192], strides = [1, 1]} : vector<64x192xf32> to vector<8x192xf32>
    %34 = arith.truncf %32 : vector<8x64xf32> to vector<8x64xbf16>
    %cst_13 = arith.constant dense<0.000000e+00> : vector<8x128xf32>
    %35 = tpu.matmul %34, %1, %cst_13 {dimension_numbers = #tpu.dot_dimension_numbers<[1], [0], [0], [1], [0, 0, 1, 1], [], []>} : vector<8x64xbf16>, vector<64x128xbf16>, vector<8x128xf32> -> vector<8x128xf32>
    %cst_14 = arith.constant dense<0.000000e+00> : vector<8x64xf32>
    %36 = tpu.matmul %34, %2, %cst_14 {dimension_numbers = #tpu.dot_dimension_numbers<[1], [0], [0], [1], [0, 0, 1, 1], [], []>} : vector<8x64xbf16>, vector<64x64xbf16>, vector<8x64xf32> -> vector<8x64xf32>
    %37 = vector.extract_strided_slice %33 {offsets = [0, 0], sizes = [8, 128], strides = [1, 1]} : vector<8x192xf32> to vector<8x128xf32>
    %38 = arith.addf %37, %35 : vector<8x128xf32>
    %cst_15 = arith.constant 5.000000e-01 : f32
    %39 = vector.broadcast %cst_15 : f32 to vector<8x128xf32>
    %40 = arith.mulf %38, %39 : vector<8x128xf32>
    %41 = math.tanh %40 : vector<8x128xf32>
    %cst_16 = arith.constant 5.000000e-01 : f32
    %42 = vector.broadcast %cst_16 : f32 to vector<8x128xf32>
    %43 = arith.mulf %41, %42 : vector<8x128xf32>
    %cst_17 = arith.constant 5.000000e-01 : f32
    %44 = vector.broadcast %cst_17 : f32 to vector<8x128xf32>
    %45 = arith.addf %43, %44 : vector<8x128xf32>
    %46 = vector.extract_strided_slice %45 {offsets = [0, 0], sizes = [8, 64], strides = [1, 1]} : vector<8x128xf32> to vector<8x64xf32>
    %47 = vector.extract_strided_slice %45 {offsets = [0, 64], sizes = [8, 64], strides = [1, 1]} : vector<8x128xf32> to vector<8x64xf32>
    %48 = vector.extract_strided_slice %33 {offsets = [0, 128], sizes = [8, 64], strides = [1, 1]} : vector<8x192xf32> to vector<8x64xf32>
    %49 = vector.broadcast %5 : vector<1x64xf32> to vector<8x64xf32>
    %50 = arith.addf %36, %49 : vector<8x64xf32>
    %51 = arith.mulf %46, %50 : vector<8x64xf32>
    %52 = arith.addf %48, %51 : vector<8x64xf32>
    %53 = math.tanh %52 : vector<8x64xf32>
    %cst_18 = arith.constant 1.000000e+00 : f32
    %54 = vector.broadcast %cst_18 : f32 to vector<8x64xf32>
    %55 = arith.subf %54, %47 : vector<8x64xf32>
    %56 = arith.mulf %55, %53 : vector<8x64xf32>
    %57 = arith.mulf %47, %32 : vector<8x64xf32>
    %58 = arith.addf %56, %57 : vector<8x64xf32>
    %59 = vector.extract_strided_slice %13 {offsets = [16, 0], sizes = [8, 192], strides = [1, 1]} : vector<64x192xf32> to vector<8x192xf32>
    %60 = arith.truncf %58 : vector<8x64xf32> to vector<8x64xbf16>
    %cst_19 = arith.constant dense<0.000000e+00> : vector<8x128xf32>
    %61 = tpu.matmul %60, %1, %cst_19 {dimension_numbers = #tpu.dot_dimension_numbers<[1], [0], [0], [1], [0, 0, 1, 1], [], []>} : vector<8x64xbf16>, vector<64x128xbf16>, vector<8x128xf32> -> vector<8x128xf32>
    %cst_20 = arith.constant dense<0.000000e+00> : vector<8x64xf32>
    %62 = tpu.matmul %60, %2, %cst_20 {dimension_numbers = #tpu.dot_dimension_numbers<[1], [0], [0], [1], [0, 0, 1, 1], [], []>} : vector<8x64xbf16>, vector<64x64xbf16>, vector<8x64xf32> -> vector<8x64xf32>
    %63 = vector.extract_strided_slice %59 {offsets = [0, 0], sizes = [8, 128], strides = [1, 1]} : vector<8x192xf32> to vector<8x128xf32>
    %64 = arith.addf %63, %61 : vector<8x128xf32>
    %cst_21 = arith.constant 5.000000e-01 : f32
    %65 = vector.broadcast %cst_21 : f32 to vector<8x128xf32>
    %66 = arith.mulf %64, %65 : vector<8x128xf32>
    %67 = math.tanh %66 : vector<8x128xf32>
    %cst_22 = arith.constant 5.000000e-01 : f32
    %68 = vector.broadcast %cst_22 : f32 to vector<8x128xf32>
    %69 = arith.mulf %67, %68 : vector<8x128xf32>
    %cst_23 = arith.constant 5.000000e-01 : f32
    %70 = vector.broadcast %cst_23 : f32 to vector<8x128xf32>
    %71 = arith.addf %69, %70 : vector<8x128xf32>
    %72 = vector.extract_strided_slice %71 {offsets = [0, 0], sizes = [8, 64], strides = [1, 1]} : vector<8x128xf32> to vector<8x64xf32>
    %73 = vector.extract_strided_slice %71 {offsets = [0, 64], sizes = [8, 64], strides = [1, 1]} : vector<8x128xf32> to vector<8x64xf32>
    %74 = vector.extract_strided_slice %59 {offsets = [0, 128], sizes = [8, 64], strides = [1, 1]} : vector<8x192xf32> to vector<8x64xf32>
    %75 = vector.broadcast %5 : vector<1x64xf32> to vector<8x64xf32>
    %76 = arith.addf %62, %75 : vector<8x64xf32>
    %77 = arith.mulf %72, %76 : vector<8x64xf32>
    %78 = arith.addf %74, %77 : vector<8x64xf32>
    %79 = math.tanh %78 : vector<8x64xf32>
    %cst_24 = arith.constant 1.000000e+00 : f32
    %80 = vector.broadcast %cst_24 : f32 to vector<8x64xf32>
    %81 = arith.subf %80, %73 : vector<8x64xf32>
    %82 = arith.mulf %81, %79 : vector<8x64xf32>
    %83 = arith.mulf %73, %58 : vector<8x64xf32>
    %84 = arith.addf %82, %83 : vector<8x64xf32>
    %85 = vector.extract_strided_slice %13 {offsets = [24, 0], sizes = [8, 192], strides = [1, 1]} : vector<64x192xf32> to vector<8x192xf32>
    %86 = arith.truncf %84 : vector<8x64xf32> to vector<8x64xbf16>
    %cst_25 = arith.constant dense<0.000000e+00> : vector<8x128xf32>
    %87 = tpu.matmul %86, %1, %cst_25 {dimension_numbers = #tpu.dot_dimension_numbers<[1], [0], [0], [1], [0, 0, 1, 1], [], []>} : vector<8x64xbf16>, vector<64x128xbf16>, vector<8x128xf32> -> vector<8x128xf32>
    %cst_26 = arith.constant dense<0.000000e+00> : vector<8x64xf32>
    %88 = tpu.matmul %86, %2, %cst_26 {dimension_numbers = #tpu.dot_dimension_numbers<[1], [0], [0], [1], [0, 0, 1, 1], [], []>} : vector<8x64xbf16>, vector<64x64xbf16>, vector<8x64xf32> -> vector<8x64xf32>
    %89 = vector.extract_strided_slice %85 {offsets = [0, 0], sizes = [8, 128], strides = [1, 1]} : vector<8x192xf32> to vector<8x128xf32>
    %90 = arith.addf %89, %87 : vector<8x128xf32>
    %cst_27 = arith.constant 5.000000e-01 : f32
    %91 = vector.broadcast %cst_27 : f32 to vector<8x128xf32>
    %92 = arith.mulf %90, %91 : vector<8x128xf32>
    %93 = math.tanh %92 : vector<8x128xf32>
    %cst_28 = arith.constant 5.000000e-01 : f32
    %94 = vector.broadcast %cst_28 : f32 to vector<8x128xf32>
    %95 = arith.mulf %93, %94 : vector<8x128xf32>
    %cst_29 = arith.constant 5.000000e-01 : f32
    %96 = vector.broadcast %cst_29 : f32 to vector<8x128xf32>
    %97 = arith.addf %95, %96 : vector<8x128xf32>
    %98 = vector.extract_strided_slice %97 {offsets = [0, 0], sizes = [8, 64], strides = [1, 1]} : vector<8x128xf32> to vector<8x64xf32>
    %99 = vector.extract_strided_slice %97 {offsets = [0, 64], sizes = [8, 64], strides = [1, 1]} : vector<8x128xf32> to vector<8x64xf32>
    %100 = vector.extract_strided_slice %85 {offsets = [0, 128], sizes = [8, 64], strides = [1, 1]} : vector<8x192xf32> to vector<8x64xf32>
    %101 = vector.broadcast %5 : vector<1x64xf32> to vector<8x64xf32>
    %102 = arith.addf %88, %101 : vector<8x64xf32>
    %103 = arith.mulf %98, %102 : vector<8x64xf32>
    %104 = arith.addf %100, %103 : vector<8x64xf32>
    %105 = math.tanh %104 : vector<8x64xf32>
    %cst_30 = arith.constant 1.000000e+00 : f32
    %106 = vector.broadcast %cst_30 : f32 to vector<8x64xf32>
    %107 = arith.subf %106, %99 : vector<8x64xf32>
    %108 = arith.mulf %107, %105 : vector<8x64xf32>
    %109 = arith.mulf %99, %84 : vector<8x64xf32>
    %110 = arith.addf %108, %109 : vector<8x64xf32>
    %111 = vector.extract_strided_slice %13 {offsets = [32, 0], sizes = [8, 192], strides = [1, 1]} : vector<64x192xf32> to vector<8x192xf32>
    %112 = arith.truncf %110 : vector<8x64xf32> to vector<8x64xbf16>
    %cst_31 = arith.constant dense<0.000000e+00> : vector<8x128xf32>
    %113 = tpu.matmul %112, %1, %cst_31 {dimension_numbers = #tpu.dot_dimension_numbers<[1], [0], [0], [1], [0, 0, 1, 1], [], []>} : vector<8x64xbf16>, vector<64x128xbf16>, vector<8x128xf32> -> vector<8x128xf32>
    %cst_32 = arith.constant dense<0.000000e+00> : vector<8x64xf32>
    %114 = tpu.matmul %112, %2, %cst_32 {dimension_numbers = #tpu.dot_dimension_numbers<[1], [0], [0], [1], [0, 0, 1, 1], [], []>} : vector<8x64xbf16>, vector<64x64xbf16>, vector<8x64xf32> -> vector<8x64xf32>
    %115 = vector.extract_strided_slice %111 {offsets = [0, 0], sizes = [8, 128], strides = [1, 1]} : vector<8x192xf32> to vector<8x128xf32>
    %116 = arith.addf %115, %113 : vector<8x128xf32>
    %cst_33 = arith.constant 5.000000e-01 : f32
    %117 = vector.broadcast %cst_33 : f32 to vector<8x128xf32>
    %118 = arith.mulf %116, %117 : vector<8x128xf32>
    %119 = math.tanh %118 : vector<8x128xf32>
    %cst_34 = arith.constant 5.000000e-01 : f32
    %120 = vector.broadcast %cst_34 : f32 to vector<8x128xf32>
    %121 = arith.mulf %119, %120 : vector<8x128xf32>
    %cst_35 = arith.constant 5.000000e-01 : f32
    %122 = vector.broadcast %cst_35 : f32 to vector<8x128xf32>
    %123 = arith.addf %121, %122 : vector<8x128xf32>
    %124 = vector.extract_strided_slice %123 {offsets = [0, 0], sizes = [8, 64], strides = [1, 1]} : vector<8x128xf32> to vector<8x64xf32>
    %125 = vector.extract_strided_slice %123 {offsets = [0, 64], sizes = [8, 64], strides = [1, 1]} : vector<8x128xf32> to vector<8x64xf32>
    %126 = vector.extract_strided_slice %111 {offsets = [0, 128], sizes = [8, 64], strides = [1, 1]} : vector<8x192xf32> to vector<8x64xf32>
    %127 = vector.broadcast %5 : vector<1x64xf32> to vector<8x64xf32>
    %128 = arith.addf %114, %127 : vector<8x64xf32>
    %129 = arith.mulf %124, %128 : vector<8x64xf32>
    %130 = arith.addf %126, %129 : vector<8x64xf32>
    %131 = math.tanh %130 : vector<8x64xf32>
    %cst_36 = arith.constant 1.000000e+00 : f32
    %132 = vector.broadcast %cst_36 : f32 to vector<8x64xf32>
    %133 = arith.subf %132, %125 : vector<8x64xf32>
    %134 = arith.mulf %133, %131 : vector<8x64xf32>
    %135 = arith.mulf %125, %110 : vector<8x64xf32>
    %136 = arith.addf %134, %135 : vector<8x64xf32>
    %137 = vector.extract_strided_slice %13 {offsets = [40, 0], sizes = [8, 192], strides = [1, 1]} : vector<64x192xf32> to vector<8x192xf32>
    %138 = arith.truncf %136 : vector<8x64xf32> to vector<8x64xbf16>
    %cst_37 = arith.constant dense<0.000000e+00> : vector<8x128xf32>
    %139 = tpu.matmul %138, %1, %cst_37 {dimension_numbers = #tpu.dot_dimension_numbers<[1], [0], [0], [1], [0, 0, 1, 1], [], []>} : vector<8x64xbf16>, vector<64x128xbf16>, vector<8x128xf32> -> vector<8x128xf32>
    %cst_38 = arith.constant dense<0.000000e+00> : vector<8x64xf32>
    %140 = tpu.matmul %138, %2, %cst_38 {dimension_numbers = #tpu.dot_dimension_numbers<[1], [0], [0], [1], [0, 0, 1, 1], [], []>} : vector<8x64xbf16>, vector<64x64xbf16>, vector<8x64xf32> -> vector<8x64xf32>
    %141 = vector.extract_strided_slice %137 {offsets = [0, 0], sizes = [8, 128], strides = [1, 1]} : vector<8x192xf32> to vector<8x128xf32>
    %142 = arith.addf %141, %139 : vector<8x128xf32>
    %cst_39 = arith.constant 5.000000e-01 : f32
    %143 = vector.broadcast %cst_39 : f32 to vector<8x128xf32>
    %144 = arith.mulf %142, %143 : vector<8x128xf32>
    %145 = math.tanh %144 : vector<8x128xf32>
    %cst_40 = arith.constant 5.000000e-01 : f32
    %146 = vector.broadcast %cst_40 : f32 to vector<8x128xf32>
    %147 = arith.mulf %145, %146 : vector<8x128xf32>
    %cst_41 = arith.constant 5.000000e-01 : f32
    %148 = vector.broadcast %cst_41 : f32 to vector<8x128xf32>
    %149 = arith.addf %147, %148 : vector<8x128xf32>
    %150 = vector.extract_strided_slice %149 {offsets = [0, 0], sizes = [8, 64], strides = [1, 1]} : vector<8x128xf32> to vector<8x64xf32>
    %151 = vector.extract_strided_slice %149 {offsets = [0, 64], sizes = [8, 64], strides = [1, 1]} : vector<8x128xf32> to vector<8x64xf32>
    %152 = vector.extract_strided_slice %137 {offsets = [0, 128], sizes = [8, 64], strides = [1, 1]} : vector<8x192xf32> to vector<8x64xf32>
    %153 = vector.broadcast %5 : vector<1x64xf32> to vector<8x64xf32>
    %154 = arith.addf %140, %153 : vector<8x64xf32>
    %155 = arith.mulf %150, %154 : vector<8x64xf32>
    %156 = arith.addf %152, %155 : vector<8x64xf32>
    %157 = math.tanh %156 : vector<8x64xf32>
    %cst_42 = arith.constant 1.000000e+00 : f32
    %158 = vector.broadcast %cst_42 : f32 to vector<8x64xf32>
    %159 = arith.subf %158, %151 : vector<8x64xf32>
    %160 = arith.mulf %159, %157 : vector<8x64xf32>
    %161 = arith.mulf %151, %136 : vector<8x64xf32>
    %162 = arith.addf %160, %161 : vector<8x64xf32>
    %163 = vector.extract_strided_slice %13 {offsets = [48, 0], sizes = [8, 192], strides = [1, 1]} : vector<64x192xf32> to vector<8x192xf32>
    %164 = arith.truncf %162 : vector<8x64xf32> to vector<8x64xbf16>
    %cst_43 = arith.constant dense<0.000000e+00> : vector<8x128xf32>
    %165 = tpu.matmul %164, %1, %cst_43 {dimension_numbers = #tpu.dot_dimension_numbers<[1], [0], [0], [1], [0, 0, 1, 1], [], []>} : vector<8x64xbf16>, vector<64x128xbf16>, vector<8x128xf32> -> vector<8x128xf32>
    %cst_44 = arith.constant dense<0.000000e+00> : vector<8x64xf32>
    %166 = tpu.matmul %164, %2, %cst_44 {dimension_numbers = #tpu.dot_dimension_numbers<[1], [0], [0], [1], [0, 0, 1, 1], [], []>} : vector<8x64xbf16>, vector<64x64xbf16>, vector<8x64xf32> -> vector<8x64xf32>
    %167 = vector.extract_strided_slice %163 {offsets = [0, 0], sizes = [8, 128], strides = [1, 1]} : vector<8x192xf32> to vector<8x128xf32>
    %168 = arith.addf %167, %165 : vector<8x128xf32>
    %cst_45 = arith.constant 5.000000e-01 : f32
    %169 = vector.broadcast %cst_45 : f32 to vector<8x128xf32>
    %170 = arith.mulf %168, %169 : vector<8x128xf32>
    %171 = math.tanh %170 : vector<8x128xf32>
    %cst_46 = arith.constant 5.000000e-01 : f32
    %172 = vector.broadcast %cst_46 : f32 to vector<8x128xf32>
    %173 = arith.mulf %171, %172 : vector<8x128xf32>
    %cst_47 = arith.constant 5.000000e-01 : f32
    %174 = vector.broadcast %cst_47 : f32 to vector<8x128xf32>
    %175 = arith.addf %173, %174 : vector<8x128xf32>
    %176 = vector.extract_strided_slice %175 {offsets = [0, 0], sizes = [8, 64], strides = [1, 1]} : vector<8x128xf32> to vector<8x64xf32>
    %177 = vector.extract_strided_slice %175 {offsets = [0, 64], sizes = [8, 64], strides = [1, 1]} : vector<8x128xf32> to vector<8x64xf32>
    %178 = vector.extract_strided_slice %163 {offsets = [0, 128], sizes = [8, 64], strides = [1, 1]} : vector<8x192xf32> to vector<8x64xf32>
    %179 = vector.broadcast %5 : vector<1x64xf32> to vector<8x64xf32>
    %180 = arith.addf %166, %179 : vector<8x64xf32>
    %181 = arith.mulf %176, %180 : vector<8x64xf32>
    %182 = arith.addf %178, %181 : vector<8x64xf32>
    %183 = math.tanh %182 : vector<8x64xf32>
    %cst_48 = arith.constant 1.000000e+00 : f32
    %184 = vector.broadcast %cst_48 : f32 to vector<8x64xf32>
    %185 = arith.subf %184, %177 : vector<8x64xf32>
    %186 = arith.mulf %185, %183 : vector<8x64xf32>
    %187 = arith.mulf %177, %162 : vector<8x64xf32>
    %188 = arith.addf %186, %187 : vector<8x64xf32>
    %189 = vector.extract_strided_slice %13 {offsets = [56, 0], sizes = [8, 192], strides = [1, 1]} : vector<64x192xf32> to vector<8x192xf32>
    %190 = arith.truncf %188 : vector<8x64xf32> to vector<8x64xbf16>
    %cst_49 = arith.constant dense<0.000000e+00> : vector<8x128xf32>
    %191 = tpu.matmul %190, %1, %cst_49 {dimension_numbers = #tpu.dot_dimension_numbers<[1], [0], [0], [1], [0, 0, 1, 1], [], []>} : vector<8x64xbf16>, vector<64x128xbf16>, vector<8x128xf32> -> vector<8x128xf32>
    %cst_50 = arith.constant dense<0.000000e+00> : vector<8x64xf32>
    %192 = tpu.matmul %190, %2, %cst_50 {dimension_numbers = #tpu.dot_dimension_numbers<[1], [0], [0], [1], [0, 0, 1, 1], [], []>} : vector<8x64xbf16>, vector<64x64xbf16>, vector<8x64xf32> -> vector<8x64xf32>
    %193 = vector.extract_strided_slice %189 {offsets = [0, 0], sizes = [8, 128], strides = [1, 1]} : vector<8x192xf32> to vector<8x128xf32>
    %194 = arith.addf %193, %191 : vector<8x128xf32>
    %cst_51 = arith.constant 5.000000e-01 : f32
    %195 = vector.broadcast %cst_51 : f32 to vector<8x128xf32>
    %196 = arith.mulf %194, %195 : vector<8x128xf32>
    %197 = math.tanh %196 : vector<8x128xf32>
    %cst_52 = arith.constant 5.000000e-01 : f32
    %198 = vector.broadcast %cst_52 : f32 to vector<8x128xf32>
    %199 = arith.mulf %197, %198 : vector<8x128xf32>
    %cst_53 = arith.constant 5.000000e-01 : f32
    %200 = vector.broadcast %cst_53 : f32 to vector<8x128xf32>
    %201 = arith.addf %199, %200 : vector<8x128xf32>
    %202 = vector.extract_strided_slice %201 {offsets = [0, 0], sizes = [8, 64], strides = [1, 1]} : vector<8x128xf32> to vector<8x64xf32>
    %203 = vector.extract_strided_slice %201 {offsets = [0, 64], sizes = [8, 64], strides = [1, 1]} : vector<8x128xf32> to vector<8x64xf32>
    %204 = vector.extract_strided_slice %189 {offsets = [0, 128], sizes = [8, 64], strides = [1, 1]} : vector<8x192xf32> to vector<8x64xf32>
    %205 = vector.broadcast %5 : vector<1x64xf32> to vector<8x64xf32>
    %206 = arith.addf %192, %205 : vector<8x64xf32>
    %207 = arith.mulf %202, %206 : vector<8x64xf32>
    %208 = arith.addf %204, %207 : vector<8x64xf32>
    %209 = math.tanh %208 : vector<8x64xf32>
    %cst_54 = arith.constant 1.000000e+00 : f32
    %210 = vector.broadcast %cst_54 : f32 to vector<8x64xf32>
    %211 = arith.subf %210, %203 : vector<8x64xf32>
    %212 = arith.mulf %211, %209 : vector<8x64xf32>
    %213 = arith.mulf %203, %188 : vector<8x64xf32>
    %214 = arith.addf %212, %213 : vector<8x64xf32>
    %215 = tpu.concatenate %32, %58, %84, %110, %136, %162, %188, %214 in 0 : vector<8x64xf32>, vector<8x64xf32>, vector<8x64xf32>, vector<8x64xf32>, vector<8x64xf32>, vector<8x64xf32>, vector<8x64xf32>, vector<8x64xf32> -> vector<64x64xf32>
    %c40 = arith.constant 40 : index
    %c0_55 = arith.constant 0 : index
    %216 = vector.load %arg1[%c40, %c0_55] : memref<216x192xf32, #tpu.memory_space<vmem>>, vector<64x192xf32>
    %cst_56 = arith.constant dense<0.000000e+00> : vector<64x192xf32>
    %217 = tpu.matmul %215, %216, %cst_56 {dimension_numbers = #tpu.dot_dimension_numbers<[1], [0], [0], [1], [0, 0, 1, 1], [], []>} : vector<64x64xf32>, vector<64x192xf32>, vector<64x192xf32> -> vector<64x192xf32>
    %c137 = arith.constant 137 : index
    %c0_57 = arith.constant 0 : index
    %218 = vector.load %arg1[%c137, %c0_57] : memref<216x192xf32, #tpu.memory_space<vmem>>, vector<1x96xf32>
    %219 = vector.extract_strided_slice %217 {offsets = [0, 0], sizes = [8, 96], strides = [1, 1]} : vector<64x192xf32> to vector<8x96xf32>
    %220 = vector.extract_strided_slice %217 {offsets = [56, 96], sizes = [8, 96], strides = [1, 1]} : vector<64x192xf32> to vector<8x96xf32>
    %221 = arith.addf %219, %220 : vector<8x96xf32>
    %222 = vector.broadcast %218 : vector<1x96xf32> to vector<8x96xf32>
    %223 = arith.addf %221, %222 : vector<8x96xf32>
    %224 = vector.extract_strided_slice %223 {offsets = [0, 0], sizes = [8, 64], strides = [1, 1]} : vector<8x96xf32> to vector<8x64xf32>
    %cst_58 = arith.constant 5.000000e-01 : f32
    %225 = vector.broadcast %cst_58 : f32 to vector<8x64xf32>
    %226 = arith.mulf %224, %225 : vector<8x64xf32>
    %227 = math.tanh %226 : vector<8x64xf32>
    %cst_59 = arith.constant 5.000000e-01 : f32
    %228 = vector.broadcast %cst_59 : f32 to vector<8x64xf32>
    %229 = arith.mulf %227, %228 : vector<8x64xf32>
    %cst_60 = arith.constant 5.000000e-01 : f32
    %230 = vector.broadcast %cst_60 : f32 to vector<8x64xf32>
    %231 = arith.addf %229, %230 : vector<8x64xf32>
    %232 = vector.extract_strided_slice %231 {offsets = [0, 0], sizes = [8, 32], strides = [1, 1]} : vector<8x64xf32> to vector<8x32xf32>
    %233 = vector.extract_strided_slice %231 {offsets = [0, 32], sizes = [8, 32], strides = [1, 1]} : vector<8x64xf32> to vector<8x32xf32>
    %234 = vector.extract_strided_slice %223 {offsets = [0, 64], sizes = [8, 32], strides = [1, 1]} : vector<8x96xf32> to vector<8x32xf32>
    %235 = vector.broadcast %6 : vector<1x32xf32> to vector<8x32xf32>
    %236 = arith.mulf %232, %235 : vector<8x32xf32>
    %237 = arith.addf %234, %236 : vector<8x32xf32>
    %238 = math.tanh %237 : vector<8x32xf32>
    %cst_61 = arith.constant 1.000000e+00 : f32
    %239 = vector.broadcast %cst_61 : f32 to vector<8x32xf32>
    %240 = arith.subf %239, %233 : vector<8x32xf32>
    %241 = arith.mulf %240, %238 : vector<8x32xf32>
    %242 = vector.extract_strided_slice %217 {offsets = [8, 0], sizes = [8, 96], strides = [1, 1]} : vector<64x192xf32> to vector<8x96xf32>
    %243 = vector.extract_strided_slice %217 {offsets = [48, 96], sizes = [8, 96], strides = [1, 1]} : vector<64x192xf32> to vector<8x96xf32>
    %244 = arith.addf %242, %243 : vector<8x96xf32>
    %245 = vector.broadcast %218 : vector<1x96xf32> to vector<8x96xf32>
    %246 = arith.addf %244, %245 : vector<8x96xf32>
    %247 = arith.truncf %241 : vector<8x32xf32> to vector<8x32xbf16>
    %cst_62 = arith.constant dense<0.000000e+00> : vector<8x64xf32>
    %248 = tpu.matmul %247, %3, %cst_62 {dimension_numbers = #tpu.dot_dimension_numbers<[1], [0], [0], [1], [0, 0, 1, 1], [], []>} : vector<8x32xbf16>, vector<32x64xbf16>, vector<8x64xf32> -> vector<8x64xf32>
    %cst_63 = arith.constant dense<0.000000e+00> : vector<8x32xf32>
    %249 = tpu.matmul %247, %4, %cst_63 {dimension_numbers = #tpu.dot_dimension_numbers<[1], [0], [0], [1], [0, 0, 1, 1], [], []>} : vector<8x32xbf16>, vector<32x32xbf16>, vector<8x32xf32> -> vector<8x32xf32>
    %250 = vector.extract_strided_slice %246 {offsets = [0, 0], sizes = [8, 64], strides = [1, 1]} : vector<8x96xf32> to vector<8x64xf32>
    %251 = arith.addf %250, %248 : vector<8x64xf32>
    %cst_64 = arith.constant 5.000000e-01 : f32
    %252 = vector.broadcast %cst_64 : f32 to vector<8x64xf32>
    %253 = arith.mulf %251, %252 : vector<8x64xf32>
    %254 = math.tanh %253 : vector<8x64xf32>
    %cst_65 = arith.constant 5.000000e-01 : f32
    %255 = vector.broadcast %cst_65 : f32 to vector<8x64xf32>
    %256 = arith.mulf %254, %255 : vector<8x64xf32>
    %cst_66 = arith.constant 5.000000e-01 : f32
    %257 = vector.broadcast %cst_66 : f32 to vector<8x64xf32>
    %258 = arith.addf %256, %257 : vector<8x64xf32>
    %259 = vector.extract_strided_slice %258 {offsets = [0, 0], sizes = [8, 32], strides = [1, 1]} : vector<8x64xf32> to vector<8x32xf32>
    %260 = vector.extract_strided_slice %258 {offsets = [0, 32], sizes = [8, 32], strides = [1, 1]} : vector<8x64xf32> to vector<8x32xf32>
    %261 = vector.extract_strided_slice %246 {offsets = [0, 64], sizes = [8, 32], strides = [1, 1]} : vector<8x96xf32> to vector<8x32xf32>
    %262 = vector.broadcast %6 : vector<1x32xf32> to vector<8x32xf32>
    %263 = arith.addf %249, %262 : vector<8x32xf32>
    %264 = arith.mulf %259, %263 : vector<8x32xf32>
    %265 = arith.addf %261, %264 : vector<8x32xf32>
    %266 = math.tanh %265 : vector<8x32xf32>
    %cst_67 = arith.constant 1.000000e+00 : f32
    %267 = vector.broadcast %cst_67 : f32 to vector<8x32xf32>
    %268 = arith.subf %267, %260 : vector<8x32xf32>
    %269 = arith.mulf %268, %266 : vector<8x32xf32>
    %270 = arith.mulf %260, %241 : vector<8x32xf32>
    %271 = arith.addf %269, %270 : vector<8x32xf32>
    %272 = vector.extract_strided_slice %217 {offsets = [16, 0], sizes = [8, 96], strides = [1, 1]} : vector<64x192xf32> to vector<8x96xf32>
    %273 = vector.extract_strided_slice %217 {offsets = [40, 96], sizes = [8, 96], strides = [1, 1]} : vector<64x192xf32> to vector<8x96xf32>
    %274 = arith.addf %272, %273 : vector<8x96xf32>
    %275 = vector.broadcast %218 : vector<1x96xf32> to vector<8x96xf32>
    %276 = arith.addf %274, %275 : vector<8x96xf32>
    %277 = arith.truncf %271 : vector<8x32xf32> to vector<8x32xbf16>
    %cst_68 = arith.constant dense<0.000000e+00> : vector<8x64xf32>
    %278 = tpu.matmul %277, %3, %cst_68 {dimension_numbers = #tpu.dot_dimension_numbers<[1], [0], [0], [1], [0, 0, 1, 1], [], []>} : vector<8x32xbf16>, vector<32x64xbf16>, vector<8x64xf32> -> vector<8x64xf32>
    %cst_69 = arith.constant dense<0.000000e+00> : vector<8x32xf32>
    %279 = tpu.matmul %277, %4, %cst_69 {dimension_numbers = #tpu.dot_dimension_numbers<[1], [0], [0], [1], [0, 0, 1, 1], [], []>} : vector<8x32xbf16>, vector<32x32xbf16>, vector<8x32xf32> -> vector<8x32xf32>
    %280 = vector.extract_strided_slice %276 {offsets = [0, 0], sizes = [8, 64], strides = [1, 1]} : vector<8x96xf32> to vector<8x64xf32>
    %281 = arith.addf %280, %278 : vector<8x64xf32>
    %cst_70 = arith.constant 5.000000e-01 : f32
    %282 = vector.broadcast %cst_70 : f32 to vector<8x64xf32>
    %283 = arith.mulf %281, %282 : vector<8x64xf32>
    %284 = math.tanh %283 : vector<8x64xf32>
    %cst_71 = arith.constant 5.000000e-01 : f32
    %285 = vector.broadcast %cst_71 : f32 to vector<8x64xf32>
    %286 = arith.mulf %284, %285 : vector<8x64xf32>
    %cst_72 = arith.constant 5.000000e-01 : f32
    %287 = vector.broadcast %cst_72 : f32 to vector<8x64xf32>
    %288 = arith.addf %286, %287 : vector<8x64xf32>
    %289 = vector.extract_strided_slice %288 {offsets = [0, 0], sizes = [8, 32], strides = [1, 1]} : vector<8x64xf32> to vector<8x32xf32>
    %290 = vector.extract_strided_slice %288 {offsets = [0, 32], sizes = [8, 32], strides = [1, 1]} : vector<8x64xf32> to vector<8x32xf32>
    %291 = vector.extract_strided_slice %276 {offsets = [0, 64], sizes = [8, 32], strides = [1, 1]} : vector<8x96xf32> to vector<8x32xf32>
    %292 = vector.broadcast %6 : vector<1x32xf32> to vector<8x32xf32>
    %293 = arith.addf %279, %292 : vector<8x32xf32>
    %294 = arith.mulf %289, %293 : vector<8x32xf32>
    %295 = arith.addf %291, %294 : vector<8x32xf32>
    %296 = math.tanh %295 : vector<8x32xf32>
    %cst_73 = arith.constant 1.000000e+00 : f32
    %297 = vector.broadcast %cst_73 : f32 to vector<8x32xf32>
    %298 = arith.subf %297, %290 : vector<8x32xf32>
    %299 = arith.mulf %298, %296 : vector<8x32xf32>
    %300 = arith.mulf %290, %271 : vector<8x32xf32>
    %301 = arith.addf %299, %300 : vector<8x32xf32>
    %302 = vector.extract_strided_slice %217 {offsets = [24, 0], sizes = [8, 96], strides = [1, 1]} : vector<64x192xf32> to vector<8x96xf32>
    %303 = vector.extract_strided_slice %217 {offsets = [32, 96], sizes = [8, 96], strides = [1, 1]} : vector<64x192xf32> to vector<8x96xf32>
    %304 = arith.addf %302, %303 : vector<8x96xf32>
    %305 = vector.broadcast %218 : vector<1x96xf32> to vector<8x96xf32>
    %306 = arith.addf %304, %305 : vector<8x96xf32>
    %307 = arith.truncf %301 : vector<8x32xf32> to vector<8x32xbf16>
    %cst_74 = arith.constant dense<0.000000e+00> : vector<8x64xf32>
    %308 = tpu.matmul %307, %3, %cst_74 {dimension_numbers = #tpu.dot_dimension_numbers<[1], [0], [0], [1], [0, 0, 1, 1], [], []>} : vector<8x32xbf16>, vector<32x64xbf16>, vector<8x64xf32> -> vector<8x64xf32>
    %cst_75 = arith.constant dense<0.000000e+00> : vector<8x32xf32>
    %309 = tpu.matmul %307, %4, %cst_75 {dimension_numbers = #tpu.dot_dimension_numbers<[1], [0], [0], [1], [0, 0, 1, 1], [], []>} : vector<8x32xbf16>, vector<32x32xbf16>, vector<8x32xf32> -> vector<8x32xf32>
    %310 = vector.extract_strided_slice %306 {offsets = [0, 0], sizes = [8, 64], strides = [1, 1]} : vector<8x96xf32> to vector<8x64xf32>
    %311 = arith.addf %310, %308 : vector<8x64xf32>
    %cst_76 = arith.constant 5.000000e-01 : f32
    %312 = vector.broadcast %cst_76 : f32 to vector<8x64xf32>
    %313 = arith.mulf %311, %312 : vector<8x64xf32>
    %314 = math.tanh %313 : vector<8x64xf32>
    %cst_77 = arith.constant 5.000000e-01 : f32
    %315 = vector.broadcast %cst_77 : f32 to vector<8x64xf32>
    %316 = arith.mulf %314, %315 : vector<8x64xf32>
    %cst_78 = arith.constant 5.000000e-01 : f32
    %317 = vector.broadcast %cst_78 : f32 to vector<8x64xf32>
    %318 = arith.addf %316, %317 : vector<8x64xf32>
    %319 = vector.extract_strided_slice %318 {offsets = [0, 0], sizes = [8, 32], strides = [1, 1]} : vector<8x64xf32> to vector<8x32xf32>
    %320 = vector.extract_strided_slice %318 {offsets = [0, 32], sizes = [8, 32], strides = [1, 1]} : vector<8x64xf32> to vector<8x32xf32>
    %321 = vector.extract_strided_slice %306 {offsets = [0, 64], sizes = [8, 32], strides = [1, 1]} : vector<8x96xf32> to vector<8x32xf32>
    %322 = vector.broadcast %6 : vector<1x32xf32> to vector<8x32xf32>
    %323 = arith.addf %309, %322 : vector<8x32xf32>
    %324 = arith.mulf %319, %323 : vector<8x32xf32>
    %325 = arith.addf %321, %324 : vector<8x32xf32>
    %326 = math.tanh %325 : vector<8x32xf32>
    %cst_79 = arith.constant 1.000000e+00 : f32
    %327 = vector.broadcast %cst_79 : f32 to vector<8x32xf32>
    %328 = arith.subf %327, %320 : vector<8x32xf32>
    %329 = arith.mulf %328, %326 : vector<8x32xf32>
    %330 = arith.mulf %320, %301 : vector<8x32xf32>
    %331 = arith.addf %329, %330 : vector<8x32xf32>
    %332 = vector.extract_strided_slice %217 {offsets = [32, 0], sizes = [8, 96], strides = [1, 1]} : vector<64x192xf32> to vector<8x96xf32>
    %333 = vector.extract_strided_slice %217 {offsets = [24, 96], sizes = [8, 96], strides = [1, 1]} : vector<64x192xf32> to vector<8x96xf32>
    %334 = arith.addf %332, %333 : vector<8x96xf32>
    %335 = vector.broadcast %218 : vector<1x96xf32> to vector<8x96xf32>
    %336 = arith.addf %334, %335 : vector<8x96xf32>
    %337 = arith.truncf %331 : vector<8x32xf32> to vector<8x32xbf16>
    %cst_80 = arith.constant dense<0.000000e+00> : vector<8x64xf32>
    %338 = tpu.matmul %337, %3, %cst_80 {dimension_numbers = #tpu.dot_dimension_numbers<[1], [0], [0], [1], [0, 0, 1, 1], [], []>} : vector<8x32xbf16>, vector<32x64xbf16>, vector<8x64xf32> -> vector<8x64xf32>
    %cst_81 = arith.constant dense<0.000000e+00> : vector<8x32xf32>
    %339 = tpu.matmul %337, %4, %cst_81 {dimension_numbers = #tpu.dot_dimension_numbers<[1], [0], [0], [1], [0, 0, 1, 1], [], []>} : vector<8x32xbf16>, vector<32x32xbf16>, vector<8x32xf32> -> vector<8x32xf32>
    %340 = vector.extract_strided_slice %336 {offsets = [0, 0], sizes = [8, 64], strides = [1, 1]} : vector<8x96xf32> to vector<8x64xf32>
    %341 = arith.addf %340, %338 : vector<8x64xf32>
    %cst_82 = arith.constant 5.000000e-01 : f32
    %342 = vector.broadcast %cst_82 : f32 to vector<8x64xf32>
    %343 = arith.mulf %341, %342 : vector<8x64xf32>
    %344 = math.tanh %343 : vector<8x64xf32>
    %cst_83 = arith.constant 5.000000e-01 : f32
    %345 = vector.broadcast %cst_83 : f32 to vector<8x64xf32>
    %346 = arith.mulf %344, %345 : vector<8x64xf32>
    %cst_84 = arith.constant 5.000000e-01 : f32
    %347 = vector.broadcast %cst_84 : f32 to vector<8x64xf32>
    %348 = arith.addf %346, %347 : vector<8x64xf32>
    %349 = vector.extract_strided_slice %348 {offsets = [0, 0], sizes = [8, 32], strides = [1, 1]} : vector<8x64xf32> to vector<8x32xf32>
    %350 = vector.extract_strided_slice %348 {offsets = [0, 32], sizes = [8, 32], strides = [1, 1]} : vector<8x64xf32> to vector<8x32xf32>
    %351 = vector.extract_strided_slice %336 {offsets = [0, 64], sizes = [8, 32], strides = [1, 1]} : vector<8x96xf32> to vector<8x32xf32>
    %352 = vector.broadcast %6 : vector<1x32xf32> to vector<8x32xf32>
    %353 = arith.addf %339, %352 : vector<8x32xf32>
    %354 = arith.mulf %349, %353 : vector<8x32xf32>
    %355 = arith.addf %351, %354 : vector<8x32xf32>
    %356 = math.tanh %355 : vector<8x32xf32>
    %cst_85 = arith.constant 1.000000e+00 : f32
    %357 = vector.broadcast %cst_85 : f32 to vector<8x32xf32>
    %358 = arith.subf %357, %350 : vector<8x32xf32>
    %359 = arith.mulf %358, %356 : vector<8x32xf32>
    %360 = arith.mulf %350, %331 : vector<8x32xf32>
    %361 = arith.addf %359, %360 : vector<8x32xf32>
    %362 = vector.extract_strided_slice %217 {offsets = [40, 0], sizes = [8, 96], strides = [1, 1]} : vector<64x192xf32> to vector<8x96xf32>
    %363 = vector.extract_strided_slice %217 {offsets = [16, 96], sizes = [8, 96], strides = [1, 1]} : vector<64x192xf32> to vector<8x96xf32>
    %364 = arith.addf %362, %363 : vector<8x96xf32>
    %365 = vector.broadcast %218 : vector<1x96xf32> to vector<8x96xf32>
    %366 = arith.addf %364, %365 : vector<8x96xf32>
    %367 = arith.truncf %361 : vector<8x32xf32> to vector<8x32xbf16>
    %cst_86 = arith.constant dense<0.000000e+00> : vector<8x64xf32>
    %368 = tpu.matmul %367, %3, %cst_86 {dimension_numbers = #tpu.dot_dimension_numbers<[1], [0], [0], [1], [0, 0, 1, 1], [], []>} : vector<8x32xbf16>, vector<32x64xbf16>, vector<8x64xf32> -> vector<8x64xf32>
    %cst_87 = arith.constant dense<0.000000e+00> : vector<8x32xf32>
    %369 = tpu.matmul %367, %4, %cst_87 {dimension_numbers = #tpu.dot_dimension_numbers<[1], [0], [0], [1], [0, 0, 1, 1], [], []>} : vector<8x32xbf16>, vector<32x32xbf16>, vector<8x32xf32> -> vector<8x32xf32>
    %370 = vector.extract_strided_slice %366 {offsets = [0, 0], sizes = [8, 64], strides = [1, 1]} : vector<8x96xf32> to vector<8x64xf32>
    %371 = arith.addf %370, %368 : vector<8x64xf32>
    %cst_88 = arith.constant 5.000000e-01 : f32
    %372 = vector.broadcast %cst_88 : f32 to vector<8x64xf32>
    %373 = arith.mulf %371, %372 : vector<8x64xf32>
    %374 = math.tanh %373 : vector<8x64xf32>
    %cst_89 = arith.constant 5.000000e-01 : f32
    %375 = vector.broadcast %cst_89 : f32 to vector<8x64xf32>
    %376 = arith.mulf %374, %375 : vector<8x64xf32>
    %cst_90 = arith.constant 5.000000e-01 : f32
    %377 = vector.broadcast %cst_90 : f32 to vector<8x64xf32>
    %378 = arith.addf %376, %377 : vector<8x64xf32>
    %379 = vector.extract_strided_slice %378 {offsets = [0, 0], sizes = [8, 32], strides = [1, 1]} : vector<8x64xf32> to vector<8x32xf32>
    %380 = vector.extract_strided_slice %378 {offsets = [0, 32], sizes = [8, 32], strides = [1, 1]} : vector<8x64xf32> to vector<8x32xf32>
    %381 = vector.extract_strided_slice %366 {offsets = [0, 64], sizes = [8, 32], strides = [1, 1]} : vector<8x96xf32> to vector<8x32xf32>
    %382 = vector.broadcast %6 : vector<1x32xf32> to vector<8x32xf32>
    %383 = arith.addf %369, %382 : vector<8x32xf32>
    %384 = arith.mulf %379, %383 : vector<8x32xf32>
    %385 = arith.addf %381, %384 : vector<8x32xf32>
    %386 = math.tanh %385 : vector<8x32xf32>
    %cst_91 = arith.constant 1.000000e+00 : f32
    %387 = vector.broadcast %cst_91 : f32 to vector<8x32xf32>
    %388 = arith.subf %387, %380 : vector<8x32xf32>
    %389 = arith.mulf %388, %386 : vector<8x32xf32>
    %390 = arith.mulf %380, %361 : vector<8x32xf32>
    %391 = arith.addf %389, %390 : vector<8x32xf32>
    %392 = vector.extract_strided_slice %217 {offsets = [48, 0], sizes = [8, 96], strides = [1, 1]} : vector<64x192xf32> to vector<8x96xf32>
    %393 = vector.extract_strided_slice %217 {offsets = [8, 96], sizes = [8, 96], strides = [1, 1]} : vector<64x192xf32> to vector<8x96xf32>
    %394 = arith.addf %392, %393 : vector<8x96xf32>
    %395 = vector.broadcast %218 : vector<1x96xf32> to vector<8x96xf32>
    %396 = arith.addf %394, %395 : vector<8x96xf32>
    %397 = arith.truncf %391 : vector<8x32xf32> to vector<8x32xbf16>
    %cst_92 = arith.constant dense<0.000000e+00> : vector<8x64xf32>
    %398 = tpu.matmul %397, %3, %cst_92 {dimension_numbers = #tpu.dot_dimension_numbers<[1], [0], [0], [1], [0, 0, 1, 1], [], []>} : vector<8x32xbf16>, vector<32x64xbf16>, vector<8x64xf32> -> vector<8x64xf32>
    %cst_93 = arith.constant dense<0.000000e+00> : vector<8x32xf32>
    %399 = tpu.matmul %397, %4, %cst_93 {dimension_numbers = #tpu.dot_dimension_numbers<[1], [0], [0], [1], [0, 0, 1, 1], [], []>} : vector<8x32xbf16>, vector<32x32xbf16>, vector<8x32xf32> -> vector<8x32xf32>
    %400 = vector.extract_strided_slice %396 {offsets = [0, 0], sizes = [8, 64], strides = [1, 1]} : vector<8x96xf32> to vector<8x64xf32>
    %401 = arith.addf %400, %398 : vector<8x64xf32>
    %cst_94 = arith.constant 5.000000e-01 : f32
    %402 = vector.broadcast %cst_94 : f32 to vector<8x64xf32>
    %403 = arith.mulf %401, %402 : vector<8x64xf32>
    %404 = math.tanh %403 : vector<8x64xf32>
    %cst_95 = arith.constant 5.000000e-01 : f32
    %405 = vector.broadcast %cst_95 : f32 to vector<8x64xf32>
    %406 = arith.mulf %404, %405 : vector<8x64xf32>
    %cst_96 = arith.constant 5.000000e-01 : f32
    %407 = vector.broadcast %cst_96 : f32 to vector<8x64xf32>
    %408 = arith.addf %406, %407 : vector<8x64xf32>
    %409 = vector.extract_strided_slice %408 {offsets = [0, 0], sizes = [8, 32], strides = [1, 1]} : vector<8x64xf32> to vector<8x32xf32>
    %410 = vector.extract_strided_slice %408 {offsets = [0, 32], sizes = [8, 32], strides = [1, 1]} : vector<8x64xf32> to vector<8x32xf32>
    %411 = vector.extract_strided_slice %396 {offsets = [0, 64], sizes = [8, 32], strides = [1, 1]} : vector<8x96xf32> to vector<8x32xf32>
    %412 = vector.broadcast %6 : vector<1x32xf32> to vector<8x32xf32>
    %413 = arith.addf %399, %412 : vector<8x32xf32>
    %414 = arith.mulf %409, %413 : vector<8x32xf32>
    %415 = arith.addf %411, %414 : vector<8x32xf32>
    %416 = math.tanh %415 : vector<8x32xf32>
    %cst_97 = arith.constant 1.000000e+00 : f32
    %417 = vector.broadcast %cst_97 : f32 to vector<8x32xf32>
    %418 = arith.subf %417, %410 : vector<8x32xf32>
    %419 = arith.mulf %418, %416 : vector<8x32xf32>
    %420 = arith.mulf %410, %391 : vector<8x32xf32>
    %421 = arith.addf %419, %420 : vector<8x32xf32>
    %422 = vector.extract_strided_slice %217 {offsets = [56, 0], sizes = [8, 96], strides = [1, 1]} : vector<64x192xf32> to vector<8x96xf32>
    %423 = vector.extract_strided_slice %217 {offsets = [0, 96], sizes = [8, 96], strides = [1, 1]} : vector<64x192xf32> to vector<8x96xf32>
    %424 = arith.addf %422, %423 : vector<8x96xf32>
    %425 = vector.broadcast %218 : vector<1x96xf32> to vector<8x96xf32>
    %426 = arith.addf %424, %425 : vector<8x96xf32>
    %427 = arith.truncf %421 : vector<8x32xf32> to vector<8x32xbf16>
    %cst_98 = arith.constant dense<0.000000e+00> : vector<8x64xf32>
    %428 = tpu.matmul %427, %3, %cst_98 {dimension_numbers = #tpu.dot_dimension_numbers<[1], [0], [0], [1], [0, 0, 1, 1], [], []>} : vector<8x32xbf16>, vector<32x64xbf16>, vector<8x64xf32> -> vector<8x64xf32>
    %cst_99 = arith.constant dense<0.000000e+00> : vector<8x32xf32>
    %429 = tpu.matmul %427, %4, %cst_99 {dimension_numbers = #tpu.dot_dimension_numbers<[1], [0], [0], [1], [0, 0, 1, 1], [], []>} : vector<8x32xbf16>, vector<32x32xbf16>, vector<8x32xf32> -> vector<8x32xf32>
    %430 = vector.extract_strided_slice %426 {offsets = [0, 0], sizes = [8, 64], strides = [1, 1]} : vector<8x96xf32> to vector<8x64xf32>
    %431 = arith.addf %430, %428 : vector<8x64xf32>
    %cst_100 = arith.constant 5.000000e-01 : f32
    %432 = vector.broadcast %cst_100 : f32 to vector<8x64xf32>
    %433 = arith.mulf %431, %432 : vector<8x64xf32>
    %434 = math.tanh %433 : vector<8x64xf32>
    %cst_101 = arith.constant 5.000000e-01 : f32
    %435 = vector.broadcast %cst_101 : f32 to vector<8x64xf32>
    %436 = arith.mulf %434, %435 : vector<8x64xf32>
    %cst_102 = arith.constant 5.000000e-01 : f32
    %437 = vector.broadcast %cst_102 : f32 to vector<8x64xf32>
    %438 = arith.addf %436, %437 : vector<8x64xf32>
    %439 = vector.extract_strided_slice %438 {offsets = [0, 0], sizes = [8, 32], strides = [1, 1]} : vector<8x64xf32> to vector<8x32xf32>
    %440 = vector.extract_strided_slice %438 {offsets = [0, 32], sizes = [8, 32], strides = [1, 1]} : vector<8x64xf32> to vector<8x32xf32>
    %441 = vector.extract_strided_slice %426 {offsets = [0, 64], sizes = [8, 32], strides = [1, 1]} : vector<8x96xf32> to vector<8x32xf32>
    %442 = vector.broadcast %6 : vector<1x32xf32> to vector<8x32xf32>
    %443 = arith.addf %429, %442 : vector<8x32xf32>
    %444 = arith.mulf %439, %443 : vector<8x32xf32>
    %445 = arith.addf %441, %444 : vector<8x32xf32>
    %446 = math.tanh %445 : vector<8x32xf32>
    %cst_103 = arith.constant 1.000000e+00 : f32
    %447 = vector.broadcast %cst_103 : f32 to vector<8x32xf32>
    %448 = arith.subf %447, %440 : vector<8x32xf32>
    %449 = arith.mulf %448, %446 : vector<8x32xf32>
    %450 = arith.mulf %440, %421 : vector<8x32xf32>
    %451 = arith.addf %449, %450 : vector<8x32xf32>
    %452 = vector.extract_strided_slice %214 {offsets = [0, 0], sizes = [8, 32], strides = [1, 1]} : vector<8x64xf32> to vector<8x32xf32>
    %453 = vector.extract_strided_slice %32 {offsets = [0, 32], sizes = [8, 32], strides = [1, 1]} : vector<8x64xf32> to vector<8x32xf32>
    %c138 = arith.constant 138 : index
    %c0_104 = arith.constant 0 : index
    %454 = vector.load %arg1[%c138, %c0_104] : memref<216x192xf32, #tpu.memory_space<vmem>>, vector<1x96xf32>
    %c104 = arith.constant 104 : index
    %c0_105 = arith.constant 0 : index
    %455 = vector.load %arg1[%c104, %c0_105] : memref<216x192xf32, #tpu.memory_space<vmem>>, vector<32x96xf32>
    %cst_106 = arith.constant dense<0.000000e+00> : vector<8x96xf32>
    %456 = tpu.matmul %452, %455, %cst_106 {dimension_numbers = #tpu.dot_dimension_numbers<[1], [0], [0], [1], [0, 0, 1, 1], [], []>} : vector<8x32xf32>, vector<32x96xf32>, vector<8x96xf32> -> vector<8x96xf32>
    %c104_107 = arith.constant 104 : index
    %c96 = arith.constant 96 : index
    %457 = vector.load %arg1[%c104_107, %c96] : memref<216x192xf32, #tpu.memory_space<vmem>>, vector<32x96xf32>
    %cst_108 = arith.constant dense<0.000000e+00> : vector<8x96xf32>
    %458 = tpu.matmul %453, %457, %cst_108 {dimension_numbers = #tpu.dot_dimension_numbers<[1], [0], [0], [1], [0, 0, 1, 1], [], []>} : vector<8x32xf32>, vector<32x96xf32>, vector<8x96xf32> -> vector<8x96xf32>
    %459 = arith.addf %456, %458 : vector<8x96xf32>
    %460 = vector.broadcast %454 : vector<1x96xf32> to vector<8x96xf32>
    %461 = arith.addf %459, %460 : vector<8x96xf32>
    %462 = vector.extract_strided_slice %461 {offsets = [0, 0], sizes = [8, 64], strides = [1, 1]} : vector<8x96xf32> to vector<8x64xf32>
    %cst_109 = arith.constant 5.000000e-01 : f32
    %463 = vector.broadcast %cst_109 : f32 to vector<8x64xf32>
    %464 = arith.mulf %462, %463 : vector<8x64xf32>
    %465 = math.tanh %464 : vector<8x64xf32>
    %cst_110 = arith.constant 5.000000e-01 : f32
    %466 = vector.broadcast %cst_110 : f32 to vector<8x64xf32>
    %467 = arith.mulf %465, %466 : vector<8x64xf32>
    %cst_111 = arith.constant 5.000000e-01 : f32
    %468 = vector.broadcast %cst_111 : f32 to vector<8x64xf32>
    %469 = arith.addf %467, %468 : vector<8x64xf32>
    %470 = vector.extract_strided_slice %469 {offsets = [0, 0], sizes = [8, 32], strides = [1, 1]} : vector<8x64xf32> to vector<8x32xf32>
    %471 = vector.extract_strided_slice %469 {offsets = [0, 32], sizes = [8, 32], strides = [1, 1]} : vector<8x64xf32> to vector<8x32xf32>
    %472 = vector.extract_strided_slice %461 {offsets = [0, 64], sizes = [8, 32], strides = [1, 1]} : vector<8x96xf32> to vector<8x32xf32>
    %473 = vector.broadcast %7 : vector<1x32xf32> to vector<8x32xf32>
    %474 = arith.mulf %470, %473 : vector<8x32xf32>
    %475 = arith.addf %472, %474 : vector<8x32xf32>
    %476 = math.tanh %475 : vector<8x32xf32>
    %cst_112 = arith.constant 1.000000e+00 : f32
    %477 = vector.broadcast %cst_112 : f32 to vector<8x32xf32>
    %478 = arith.subf %477, %471 : vector<8x32xf32>
    %479 = arith.mulf %478, %476 : vector<8x32xf32>
    %c0_113 = arith.constant 0 : index
    %c38 = arith.constant 38 : index
    %480 = vector.load %arg0[%c0_113, %c38] : memref<64x40xf32, #tpu.memory_space<vmem>>, vector<8x2xf32>
    %481 = vector.extract_strided_slice %480 {offsets = [0, 0], sizes = [8, 1], strides = [1, 1]} : vector<8x2xf32> to vector<8x1xf32>
    %c144 = arith.constant 144 : index
    %c0_114 = arith.constant 0 : index
    %482 = vector.load %arg1[%c144, %c0_114] : memref<216x192xf32, #tpu.memory_space<vmem>>, vector<1x64xf32>
    %483 = vector.broadcast %481 : vector<8x1xf32> to vector<8x64xf32>
    %484 = vector.broadcast %482 : vector<1x64xf32> to vector<8x64xf32>
    %485 = arith.mulf %483, %484 : vector<8x64xf32>
    %486 = vector.extract_strided_slice %480 {offsets = [0, 1], sizes = [8, 1], strides = [1, 1]} : vector<8x2xf32> to vector<8x1xf32>
    %c145 = arith.constant 145 : index
    %c0_115 = arith.constant 0 : index
    %487 = vector.load %arg1[%c145, %c0_115] : memref<216x192xf32, #tpu.memory_space<vmem>>, vector<1x64xf32>
    %488 = vector.broadcast %486 : vector<8x1xf32> to vector<8x64xf32>
    %489 = vector.broadcast %487 : vector<1x64xf32> to vector<8x64xf32>
    %490 = arith.mulf %488, %489 : vector<8x64xf32>
    %491 = arith.addf %485, %490 : vector<8x64xf32>
    %c152 = arith.constant 152 : index
    %c0_116 = arith.constant 0 : index
    %492 = vector.load %arg1[%c152, %c0_116] : memref<216x192xf32, #tpu.memory_space<vmem>>, vector<32x64xf32>
    %cst_117 = arith.constant dense<0.000000e+00> : vector<8x64xf32>
    %493 = tpu.matmul %451, %492, %cst_117 {dimension_numbers = #tpu.dot_dimension_numbers<[1], [0], [0], [1], [0, 0, 1, 1], [], []>} : vector<8x32xf32>, vector<32x64xf32>, vector<8x64xf32> -> vector<8x64xf32>
    %494 = arith.addf %491, %493 : vector<8x64xf32>
    %c184 = arith.constant 184 : index
    %c0_118 = arith.constant 0 : index
    %495 = vector.load %arg1[%c184, %c0_118] : memref<216x192xf32, #tpu.memory_space<vmem>>, vector<32x64xf32>
    %cst_119 = arith.constant dense<0.000000e+00> : vector<8x64xf32>
    %496 = tpu.matmul %479, %495, %cst_119 {dimension_numbers = #tpu.dot_dimension_numbers<[1], [0], [0], [1], [0, 0, 1, 1], [], []>} : vector<8x32xf32>, vector<32x64xf32>, vector<8x64xf32> -> vector<8x64xf32>
    %497 = arith.addf %494, %496 : vector<8x64xf32>
    %c142 = arith.constant 142 : index
    %c0_120 = arith.constant 0 : index
    %498 = vector.load %arg1[%c142, %c0_120] : memref<216x192xf32, #tpu.memory_space<vmem>>, vector<1x64xf32>
    %499 = vector.broadcast %498 : vector<1x64xf32> to vector<8x64xf32>
    %500 = arith.addf %497, %499 : vector<8x64xf32>
    %cst_121 = arith.constant 0.000000e+00 : f32
    %501 = vector.broadcast %cst_121 : f32 to vector<8x64xf32>
    %502 = arith.maximumf %500, %501 : vector<8x64xf32>
    %c143 = arith.constant 143 : index
    %c0_122 = arith.constant 0 : index
    %503 = vector.load %arg1[%c143, %c0_122] : memref<216x192xf32, #tpu.memory_space<vmem>>, vector<1x64xf32>
    %c143_123 = arith.constant 143 : index
    %c64 = arith.constant 64 : index
    %504 = vector.load %arg1[%c143_123, %c64] : memref<216x192xf32, #tpu.memory_space<vmem>>, vector<1x1xf32>
    %505 = vector.broadcast %503 : vector<1x64xf32> to vector<8x64xf32>
    %506 = arith.mulf %502, %505 : vector<8x64xf32>
    %cst_124 = arith.constant dense<0.000000e+00> : vector<8xf32>
    %507 = vector.multi_reduction <add>, %506, %cst_124 [1] : vector<8x64xf32> to vector<8xf32>
    %508 = vector.shape_cast %507 : vector<8xf32> to vector<8x1xf32>
    %509 = vector.broadcast %504 : vector<1x1xf32> to vector<8x1xf32>
    %510 = arith.addf %508, %509 : vector<8x1xf32>
    %c0_125 = arith.constant 0 : index
    %c0_126 = arith.constant 0 : index
    %511 = vector.load %arg3[%c0_125, %c0_126] : memref<8x1xf32, #tpu.memory_space<vmem>>, vector<8x1xf32>
    tpu.vector_store %arg3[%c0_125, %c0_126], %510 {strides = array<i32>} : memref<8x1xf32, #tpu.memory_space<vmem>>, vector<8x1xf32>,
    return
  }
}

</mosaic_0001>

<bundles_post_ra>
// kernel: manager_model2.1
= control target key start
LH: loop header
LB: loop body
LE: loop exit
PB: predicated region body
PF: predicated region fallthrough
CT: control target
= control target key end

     0   :  { %v3083_v3 = vmov 0.0   ;;  %vm61_vm0 = vcmask 326656   ;;  %v51_v16 = vlaneseq  ;;  %vm3084_vm1 = vmmov 0   ;;  %s3085_s19 = smov 64   ;;  %s3086_s22 = smov 32   ;;  %s3926_s1 = inlined_call_operand.vmem [shape: f32[216,192], index: 1, kind: input, shape index: {}]   ;;  %s3927_s0 = inlined_call_operand.vmem [shape: f32[64,40], index: 0, kind: input, shape index: {}]   ;;  %s3928_s2 = inlined_call_operand.vmem [shape: bf16[96,192], index: 2, kind: input, shape index: {}]   ;;  %s3929_s3 = inlined_call_operand.vmem [shape: f32[8,1], index: 3, kind: output, shape index: {}]  }
   0x1   :  { %v39_v0 = vld [vmem:[%s3926_s1 + $0x8] sm:$0xff]  ;;  %v41_v1 = vld [vmem:[%s3926_s1 + $0x18] sm:$0xff]  ;;  %v38_v2 = vld [vmem:[%s3926_s1] sm:$0xff]  ;;  %150 = vmatprep.mubr.f32.mxu0 %v3083_v3  ;;  %2599 = vmatprep.subr.bf16.mxu1 %v3083_v3  ;;  %vm240_vm2 = vcmask 523264   ;;  %vm1150_vm3 = vcmask 261120   ;;  %s3087_s4 = smov 96  }
   0x2   :  { %v2923_v4 = vpack.c.bf16 %v41_v1, %v39_v0  ;;  %v40_v5 = vld [vmem:[%s3926_s1 + $0x10] sm:$0xff]  ;;  %v43_v6 = vld [vmem:[%s3926_s1 + $0x28] sm:$0xff]  ;;  %v45_v7 = vld [vmem:[%s3926_s1 + $0x38] sm:$0xff]  ;;  %v52_v17 = vshrl.u32 %v51_v16, 7  ;;  %2607 = vmatprep.mubr.msk.bf16.mxu1 %vm3084_vm1, %v3083_v3  ;;  %vm2402_vm4 = vcmask 7168  }
   0x3   :  { %v2925_v8 = vpack.c.bf16 %v40_v5, %v38_v2  ;;  %v2927_v9 = vpack.c.bf16 %v45_v7, %v43_v6  ;;  %v42_v10 = vld [vmem:[%s3926_s1 + $0x20] sm:$0xff]  ;;  %v44_v11 = vld [vmem:[%s3926_s1 + $0x30] sm:$0xff]  ;;  %v47_v13 = vld [vmem:[%s3926_s1 + $0x48] sm:$0xff] }
   0x4   :  { %2924 = vmatprep.subr.bf16.mxu0 %v2923_v4  ;;  %v2929_v12 = vpack.c.bf16 %v44_v11, %v42_v10  ;;  %v46_v14 = vld [vmem:[%s3926_s1 + $0x40] sm:$0xff]  ;;  %v53_v18 = vsub.s32 0, %v52_v17  ;;  %v2408_v19 = vld [vmem:[%s3926_s1 + $0x110] ss:$8 sm:$0x3]  ;;  %v57_v25 = vsub.s32 1, %v52_v17 }
   0x5   :  { %2926 = vmatpush1.bf16.msra.mxu0 %v2925_v8  ;;  %v30_v15 = vld [vmem:[%s3927_s0] sm:$0xff]  ;;  %v3160_v29 = vld [vmem:[%s3926_s1 + $0x113] ss:$0 sm:$0xff]  ;;  %v31_v34 = vld [vmem:[%s3927_s0 + $0x8] sm:$0xff] }
   0x6   :  { %2928 = vmatprep.subr.bf16.mxu0 %v2927_v9  ;;  %v3152_v20 = vrot.slane %v2408_v19, %v53_v18  ;;  %v3155_v28 = vrot.slane %v2408_v19, %v57_v25  ;;  %v3170_v35 = vld [vmem:[%s3928_s2] ss:$8 sps:$4 sm:$0xff]   ;;  %v3180_v36 = vld [vmem:[%s3928_s2 + $0x10] ss:$8 sps:$4 sm:$0xff]   ;;  %v3216_v46 = vld [vmem:[%s3928_s2 + $0x4] ss:$8 sps:$4 sm:$0xff]  }
   0x7   :  { %2600 = vmatpush3.bf16.msra.mxu1 %v3170_v35  ;;  %v3189_v37 = vld [vmem:[%s3928_s2 + $0x20] ss:$8 sps:$4 sm:$0xff]   ;;  %v3199_v39 = vld [vmem:[%s3928_s2 + $0x30] ss:$8 sps:$4 sm:$0xff]   ;;  %v3223_v48 = vld [vmem:[%s3928_s2 + $0x14] ss:$8 sps:$4 sm:$0xff]  }
   0x8   :  { %2601 = vmatprep.subr.bf16.mxu1 %v3083_v3  ;;  %v3232_v49 = vld [vmem:[%s3928_s2 + $0x24] ss:$8 sps:$4 sm:$0xff]   ;;  %v3239_v50 = vld [vmem:[%s3928_s2 + $0x34] ss:$8 sps:$4 sm:$0xff]  }
   0x9   :  { %2930 = vmatpush1.bf16.msra.mxu0 %v2929_v12  ;;  %v32_v6 = vld [vmem:[%s3927_s0 + $0x10] sm:$0xff]  ;;  %v33_v7 = vld [vmem:[%s3927_s0 + $0x18] sm:$0xff]  ;;  %v34_v9 = vld [vmem:[%s3927_s0 + $0x20] sm:$0xff] }
   0xa   :  { %94 = vmatprep.subr.mxu0 %v47_v13  ;;  %v35_v10 = vld [vmem:[%s3927_s0 + $0x28] sm:$0xff]  ;;  %v36_v11 = vld [vmem:[%s3927_s0 + $0x30] sm:$0xff]  ;;  %v37_v12 = vld [vmem:[%s3927_s0 + $0x38] sm:$0xff] }
   0xb   :  { %2602 = vmatpush3.bf16.msra.mxu1 %v3180_v36 }
   0xc   :  { %2603 = vmatprep.subr.bf16.mxu1 %v3083_v3 }
   0xd   :  { %95 = vmatpush1.msra.mxu0 %v46_v14 }
   0xe   :  { %2409 = vmatmul.mubr.msk.f32.vlgmr.msra.gmra.mrb[0].mxu0 %vm61_vm0, %v30_v15  ;;  %2623 = vmatprep.subr.bf16.mxu0 %v3083_v3 }
   0xf   :  { %156 = vmatprep.mubr.f32.mxu0 %v3083_v3  ;;  %2624 = vmatpush3.bf16.msra.mxu0 %v3170_v35 }
  0x10   :  { %2625 = vmatprep.subr.bf16.mxu0 %v3083_v3  ;;  %2604 = vmatpush3.bf16.msra.mxu1 %v3189_v37 }
  0x11   :  { %2605 = vmatprep.subr.bf16.mxu1 %v3083_v3 }
  0x12   :  { %2410 = vmatmul.mubr.msk.f32.gmra.mrb[2].mxu0 %vm61_vm0, %v31_v34 }
  0x13   :  { %162 = vmatprep.mubr.f32.mxu0 %v3083_v3  ;;  %2626 = vmatpush3.bf16.msra.mxu0 %v3180_v36 }
  0x14   :  { %2627 = vmatprep.subr.bf16.mxu0 %v3083_v3  ;;  %2606 = vmatpush3.bf16.msra.mxu1 %v3199_v39 }
  0x15   :  { %2611 = vmatprep.subr.bf16.mxu1 %v3083_v3 }
  0x16   :  { %2411 = vmatmul.mubr.msk.f32.gmra.mrb[4].mxu0 %vm61_vm0, %v32_v6 }
  0x17   :  { %2628 = vmatpush3.bf16.msra.mxu0 %v3189_v37  ;;  %168 = vmatprep.mubr.f32.mxu0 %v3083_v3 }
  0x18   :  { %2629 = vmatprep.subr.bf16.mxu0 %v3083_v3 }
  0x1a   :  { %2412 = vmatmul.mubr.msk.f32.gmra.mrb[6].mxu0 %vm61_vm0, %v33_v7 }
  0x1b   :  { %2630 = vmatpush3.bf16.msra.mxu0 %v3199_v39  ;;  %174 = vmatprep.mubr.f32.mxu0 %v3083_v3 }
  0x1c   :  { %2647 = vmatprep.subr.bf16.mxu0 %v3083_v3 }
  0x1e   :  { %2413 = vmatmul.mubr.msk.f32.gmra.mrb[8].mxu0 %vm61_vm0, %v34_v9 }
  0x1f   :  { %180 = vmatprep.mubr.f32.mxu0 %v3083_v3 }
  0x22   :  { %2414 = vmatmul.mubr.msk.f32.gmra.mrb[10].mxu0 %vm61_vm0, %v35_v10 }
  0x23   :  { %186 = vmatprep.mubr.f32.mxu0 %v3083_v3 }
  0x26   :  { %2415 = vmatmul.mubr.msk.f32.gmra.mrb[12].mxu0 %vm61_vm0, %v36_v11 }
  0x27   :  { %192 = vmatprep.mubr.f32.mxu0 %v3083_v3 }
  0x2a   :  { %2416 = vmatmul.mubr.msk.f32.gmra.mrb[14].mxu0 %vm61_vm0, %v37_v12 }
  0x2b   :  { %2631 = vmatprep.mubr.msk.bf16.mxu0 %vm3084_vm1, %v3083_v3 }
  0xe1   :  { %v152_v21 = vpop.f32.mrb[0].mxu0 }
  0xe2   :  { %v153_v22 = vadd.f32 %v152_v21, %v3152_v20  ;;  %v154_v23 = vpop.f32.mrb[1].mxu0 }
  0xe3   :  { %v155_v31 = vadd.f32 %v154_v23, %v3155_v28 }
  0xe4   :  { %v199_v24 = vmul.f32 0.5, %v153_v22 }
  0xe5   :  { %v158_v44 = vpop.f32.mrb[2].mxu0 }
  0xe6   :  { %3015 = vtanh.f32 %v199_v24  ;;  %v160_v45 = vpop.f32.mrb[3].mxu0  ;;  %v159_v51 = vadd.f32 %v158_v44, %v3152_v20 }
  0xe7   :  { %v161_v2 = vadd.f32 %v160_v45, %v3155_v28 }
  0xe9   :  { %v164_v19 = vpop.f32.mrb[4].mxu0 }
  0xea   :  { %v166_v21 = vpop.f32.mrb[5].mxu0 }
  0xed   :  { %v3296_v22 = vpop.f32.mrb[6].mxu0 }
  0xee   :  { %v3298_v23 = vpop.f32.mrb[7].mxu0  ;;  %v171_v7 = vadd.f32 %v3296_v22, %v3152_v20 }
  0xf0   :  { %v3016_v26 = vpop.eup %3015 }
  0xf1   :  { %v201_v27 = vmul.f32 0.5, %v3016_v26  ;;  %v3300_v24 = vpop.f32.mrb[8].mxu0 }
  0xf2   :  { %v3302_v25 = vpop.f32.mrb[9].mxu0 }
  0xf3   :  { %v202_v30 = vadd.f32 0.5, %v201_v27 }
  0xf5   :  { %v203_v32 = vmul.f32 %v202_v30, %v3160_v29  ;;  %v206_v40 = vsub.f32 1.0, %v202_v30  ;;  %v3304_v26 = vpop.f32.mrb[10].mxu0 }
  0xf6   :  { %v3306_v27 = vpop.f32.mrb[11].mxu0 }
  0xf7   :  { %v204_v33 = vadd.f32 %v203_v32, %v155_v31 }
  0xf9   :  { %3017 = vtanh.f32 %v204_v33  ;;  %v3308_v30 = vpop.f32.mrb[12].mxu0 }
  0xfa   :  { %v3310_v31 = vpop.f32.mrb[13].mxu0 }
  0xfd   :  { %v3312_v32 = vpop.f32.mrb[14].mxu0 }
  0xfe   :  { %v3314_v33 = vpop.f32.mrb[15].mxu0 }
 0x103   :  { %v3018_v38 = vpop.eup %3017 }
 0x104   :  { %208 = vrot.lane.b32.xlu0 %v3018_v38, %s3085_s19  ;;  %v165_v38 = vadd.f32 %v164_v19, %v3152_v20 }
 0x176   :  { %v209_v41 = vpop.permute.xlu0 %208 }
 0x177   :  { %v3208_v42 = vmul.f32 %v209_v41, %v206_v40 }
 0x179   :  { %v212_v43 = vpack.c.bf16 %v3208_v42, %v3208_v42 }
 0x17b   :  { %214 = vrot.lane.b32.xlu0 %v212_v43, %s3085_s19 }
 0x1ed   :  { %v215_v47 = vpop.permute.xlu0 %214 }
 0x1ee   :  { %2608 = vmatmul.mubr.msk.bf16.vlgmr.msra.gmra.mrb[0].mxu1 %vm240_vm2, %v215_v47 }
 0x1ef   :  { %2612 = vmatpush3.bf16.msra.mxu1 %v3216_v46  ;;  %2619 = vmatprep.mubr.msk.bf16.mxu1 %vm3084_vm1, %v3083_v3 }
 0x1f0   :  { %2613 = vmatprep.subr.bf16.mxu1 %v3083_v3 }
 0x1f3   :  { %2614 = vmatpush3.bf16.msra.mxu1 %v3223_v48 }
 0x1f4   :  { %2615 = vmatprep.subr.bf16.mxu1 %v3083_v3 }
 0x1f7   :  { %2616 = vmatpush3.bf16.msra.mxu1 %v3232_v49 }
 0x1f8   :  { %2617 = vmatprep.subr.bf16.mxu1 %v3083_v3 }
 0x1fb   :  { %2618 = vmatpush3.bf16.msra.mxu1 %v3239_v50 }
 0x1fc   :  { %2635 = vmatprep.subr.bf16.mxu1 %v3083_v3 }
 0x1fe   :  { %2620 = vmatmul.mubr.msk.bf16.vlgmr.msra.gmra.mrb[4].mxu1 %vm240_vm2, %v215_v47 }
 0x1ff   :  { %2636 = vmatpush3.bf16.msra.mxu1 %v3216_v46  ;;  %2643 = vmatprep.mubr.msk.bf16.mxu1 %vm3084_vm1, %v3083_v3 }
 0x200   :  { %2637 = vmatprep.subr.bf16.mxu1 %v3083_v3 }
 0x203   :  { %2638 = vmatpush3.bf16.msra.mxu1 %v3223_v48 }
 0x204   :  { %2639 = vmatprep.subr.bf16.mxu1 %v3083_v3 }
 0x207   :  { %2640 = vmatpush3.bf16.msra.mxu1 %v3232_v49 }
 0x208   :  { %2641 = vmatprep.subr.bf16.mxu1 %v3083_v3 }
 0x20b   :  { %2642 = vmatpush3.bf16.msra.mxu1 %v3239_v50 }
 0x20c   :  { %2659 = vmatprep.subr.bf16.mxu1 %v3083_v3 }
 0x2c1   :  { %v278_v52 = vpop.f32.mrb[0].mxu1 }
 0x2c2   :  { %v284_v53 = vadd.f32 %v278_v52, %v159_v51  ;;  %v2609_v54 = vpop.f32.mrb[1].mxu1 }
 0x2c3   :  { %v281_v55 = vpop.f32.mrb[2].mxu1 }
 0x2c4   :  { %v285_v56 = vmul.f32 0.5, %v284_v53  ;;  %v2610_v57 = vpop.f32.mrb[3].mxu1 }
 0x2c6   :  { %3019 = vtanh.f32 %v285_v56 }
 0x2d0   :  { %v3020_v58 = vpop.eup %3019 }
 0x2d1   :  { %v287_v59 = vmul.f32 0.5, %v3020_v58  ;;  %v339_v60 = vpop.f32.mrb[4].mxu1 }
 0x2d2   :  { %v2621_v61 = vpop.f32.mrb[5].mxu1  ;;  %v340_v63 = vadd.f32 %v339_v60, %v3160_v29 }
 0x2d3   :  { %v288_v62 = vadd.f32 0.5, %v287_v59  ;;  %v342_v0 = vpop.f32.mrb[6].mxu1  ;;  %v167_v59 = vadd.f32 %v166_v21, %v3155_v28 }
 0x2d4   :  { %v2622_v1 = vpop.f32.mrb[7].mxu1 }
 0x2d5   :  { %v345_v4 = vmul.f32 %v340_v63, %v288_v62  ;;  %v348_v13 = vsub.f32 1.0, %v288_v62  ;;  %v354_v15 = vmul.f32 %v288_v62, %v3208_v42 }
 0x2d7   :  { %v346_v5 = vadd.f32 %v345_v4, %v161_v2 }
 0x2d9   :  { %3021 = vtanh.f32 %v346_v5 }
 0x2e3   :  { %v3022_v8 = vpop.eup %3021 }
 0x2e4   :  { %350 = vrot.lane.b32.xlu1 %v3022_v8, %s3085_s19 }
 0x356   :  { %v351_v14 = vpop.permute.xlu1 %350 }
 0x357   :  { %v353_v16 = vmul.f32 %v351_v14, %v348_v13 }
 0x359   :  { %v3291_v17 = vadd.f32 %v354_v15, %v353_v16 }
 0x35b   :  { %v356_v18 = vpack.c.bf16 %v3291_v17, %v3291_v17 }
 0x35d   :  { %358 = vrot.lane.b32.xlu1 %v356_v18, %s3085_s19 }
 0x3cf   :  { %v359_v34 = vpop.permute.xlu1 %358 }
 0x3d0   :  { %2632 = vmatmul.mubr.msk.bf16.vlgmr.msra.gmra.mrb[16].mxu0 %vm240_vm2, %v359_v34  ;;  %2644 = vmatmul.mubr.msk.bf16.vlgmr.msra.gmra.mrb[8].mxu1 %vm240_vm2, %v359_v34 }
 0x3d1   :  { %2648 = vmatpush3.bf16.msra.mxu0 %v3170_v35  ;;  %2660 = vmatpush3.bf16.msra.mxu1 %v3216_v46 }
 0x3d2   :  { %2649 = vmatprep.subr.bf16.mxu0 %v3083_v3  ;;  %2661 = vmatprep.subr.bf16.mxu1 %v3083_v3 }
 0x3d3   :  { %2655 = vmatprep.mubr.msk.bf16.mxu0 %vm3084_vm1, %v3083_v3  ;;  %2667 = vmatprep.mubr.msk.bf16.mxu1 %vm3084_vm1, %v3083_v3 }
 0x3d5   :  { %2650 = vmatpush3.bf16.msra.mxu0 %v3180_v36  ;;  %2662 = vmatpush3.bf16.msra.mxu1 %v3223_v48 }
 0x3d6   :  { %2651 = vmatprep.subr.bf16.mxu0 %v3083_v3  ;;  %2663 = vmatprep.subr.bf16.mxu1 %v3083_v3 }
 0x3d9   :  { %2652 = vmatpush3.bf16.msra.mxu0 %v3189_v37  ;;  %2664 = vmatpush3.bf16.msra.mxu1 %v3232_v49 }
 0x3da   :  { %2653 = vmatprep.subr.bf16.mxu0 %v3083_v3  ;;  %2665 = vmatprep.subr.bf16.mxu1 %v3083_v3 }
 0x3dd   :  { %2654 = vmatpush3.bf16.msra.mxu0 %v3199_v39  ;;  %2666 = vmatpush3.bf16.msra.mxu1 %v3239_v50 }
 0x3de   :  { %2671 = vmatprep.subr.bf16.mxu0 %v3083_v3  ;;  %2683 = vmatprep.subr.bf16.mxu1 %v3083_v3 }
 0x4a3   :  { %v397_v40 = vpop.f32.mrb[16].mxu0  ;;  %v442_v41 = vpop.f32.mrb[8].mxu1 }
 0x4a4   :  { %v403_v43 = vadd.f32 %v397_v40, %v165_v38  ;;  %v2633_v44 = vpop.f32.mrb[17].mxu0  ;;  %v2645_v45 = vpop.f32.mrb[9].mxu1  ;;  %v443_v58 = vadd.f32 %v442_v41, %v3160_v29  ;;  %v173_v40 = vadd.f32 %v3298_v23, %v3155_v28  ;;  %v177_v23 = vadd.f32 %v3300_v24, %v3152_v20 }
 0x4a5   :  { %v400_v47 = vpop.f32.mrb[18].mxu0  ;;  %v445_v51 = vpop.f32.mrb[10].mxu1 }
 0x4a6   :  { %v404_v52 = vmul.f32 0.5, %v403_v43  ;;  %v2634_v53 = vpop.f32.mrb[19].mxu0  ;;  %v2646_v54 = vpop.f32.mrb[11].mxu1 }
 0x4a8   :  { %3023 = vtanh.f32 %v404_v52 }
 0x4b2   :  { %v3024_v55 = vpop.eup %3023 }
 0x4b3   :  { %v406_v56 = vmul.f32 0.5, %v3024_v55 }
 0x4b5   :  { %v407_v57 = vadd.f32 0.5, %v406_v56 }
 0x4b7   :  { %v448_v60 = vmul.f32 %v443_v58, %v407_v57  ;;  %v451_v63 = vsub.f32 1.0, %v407_v57  ;;  %v457_v1 = vmul.f32 %v407_v57, %v3291_v17 }
 0x4b9   :  { %v449_v61 = vadd.f32 %v448_v60, %v167_v59 }
 0x4bb   :  { %3025 = vtanh.f32 %v449_v61 }
 0x4c5   :  { %v3026_v62 = vpop.eup %3025 }
 0x4c6   :  { %453 = vrot.lane.b32.xlu0 %v3026_v62, %s3085_s19 }
 0x538   :  { %v454_v0 = vpop.permute.xlu0 %453 }
 0x539   :  { %v456_v2 = vmul.f32 %v454_v0, %v451_v63 }
 0x53b   :  { %v3343_v4 = vadd.f32 %v457_v1, %v456_v2 }
 0x53d   :  { %v459_v5 = vpack.c.bf16 %v3343_v4, %v3343_v4 }
 0x53f   :  { %461 = vrot.lane.b32.xlu1 %v459_v5, %s3085_s19 }
 0x5b1   :  { %v462_v6 = vpop.permute.xlu1 %461 }
 0x5b2   :  { %2656 = vmatmul.mubr.msk.bf16.vlgmr.msra.gmra.mrb[20].mxu0 %vm240_vm2, %v462_v6  ;;  %2668 = vmatmul.mubr.msk.bf16.vlgmr.msra.gmra.mrb[12].mxu1 %vm240_vm2, %v462_v6 }
 0x5b3   :  { %2672 = vmatpush3.bf16.msra.mxu0 %v3170_v35  ;;  %2684 = vmatpush3.bf16.msra.mxu1 %v3216_v46 }
 0x5b4   :  { %2673 = vmatprep.subr.bf16.mxu0 %v3083_v3  ;;  %2685 = vmatprep.subr.bf16.mxu1 %v3083_v3 }
 0x5b5   :  { %2679 = vmatprep.mubr.msk.bf16.mxu0 %vm3084_vm1, %v3083_v3  ;;  %2691 = vmatprep.mubr.msk.bf16.mxu1 %vm3084_vm1, %v3083_v3 }
 0x5b7   :  { %2674 = vmatpush3.bf16.msra.mxu0 %v3180_v36  ;;  %2686 = vmatpush3.bf16.msra.mxu1 %v3223_v48 }
 0x5b8   :  { %2675 = vmatprep.subr.bf16.mxu0 %v3083_v3  ;;  %2687 = vmatprep.subr.bf16.mxu1 %v3083_v3 }
 0x5bb   :  { %2676 = vmatpush3.bf16.msra.mxu0 %v3189_v37  ;;  %2688 = vmatpush3.bf16.msra.mxu1 %v3232_v49 }
 0x5bc   :  { %2677 = vmatprep.subr.bf16.mxu0 %v3083_v3  ;;  %2689 = vmatprep.subr.bf16.mxu1 %v3083_v3 }
 0x5bf   :  { %2678 = vmatpush3.bf16.msra.mxu0 %v3199_v39  ;;  %2690 = vmatpush3.bf16.msra.mxu1 %v3239_v50 }
 0x5c0   :  { %2695 = vmatprep.subr.bf16.mxu0 %v3083_v3  ;;  %2707 = vmatprep.subr.bf16.mxu1 %v3083_v3 }
 0x685   :  { %v500_v8 = vpop.f32.mrb[20].mxu0  ;;  %v545_v9 = vpop.f32.mrb[12].mxu1 }
 0x686   :  { %v506_v10 = vadd.f32 %v500_v8, %v171_v7  ;;  %v2657_v11 = vpop.f32.mrb[21].mxu0  ;;  %v2669_v12 = vpop.f32.mrb[13].mxu1  ;;  %v546_v38 = vadd.f32 %v545_v9, %v3160_v29  ;;  %v179_v7 = vadd.f32 %v3302_v25, %v3155_v28  ;;  %v183_v25 = vadd.f32 %v3304_v26, %v3152_v20 }
 0x687   :  { %v503_v13 = vpop.f32.mrb[22].mxu0  ;;  %v548_v14 = vpop.f32.mrb[14].mxu1 }
 0x688   :  { %v507_v15 = vmul.f32 0.5, %v506_v10  ;;  %v2658_v16 = vpop.f32.mrb[23].mxu0  ;;  %v2670_v18 = vpop.f32.mrb[15].mxu1 }
 0x68a   :  { %3027 = vtanh.f32 %v507_v15 }
 0x694   :  { %v3028_v19 = vpop.eup %3027 }
 0x695   :  { %v509_v21 = vmul.f32 0.5, %v3028_v19 }
 0x697   :  { %v510_v34 = vadd.f32 0.5, %v509_v21 }
 0x699   :  { %v551_v22 = vmul.f32 %v546_v38, %v510_v34  ;;  %v554_v44 = vsub.f32 1.0, %v510_v34  ;;  %v560_v47 = vmul.f32 %v510_v34, %v3343_v4 }
 0x69b   :  { %v552_v41 = vadd.f32 %v551_v22, %v173_v40 }
 0x69d   :  { %3029 = vtanh.f32 %v552_v41 }
 0x6a7   :  { %v3030_v43 = vpop.eup %3029 }
 0x6a8   :  { %556 = vrot.lane.b32.xlu0 %v3030_v43, %s3085_s19 }
 0x71a   :  { %v557_v45 = vpop.permute.xlu0 %556 }
 0x71b   :  { %v559_v51 = vmul.f32 %v557_v45, %v554_v44 }
 0x71d   :  { %v3377_v52 = vadd.f32 %v560_v47, %v559_v51 }
 0x71f   :  { %v562_v53 = vpack.c.bf16 %v3377_v52, %v3377_v52 }
 0x721   :  { %564 = vrot.lane.b32.xlu1 %v562_v53, %s3085_s19 }
 0x793   :  { %v565_v54 = vpop.permute.xlu1 %564 }
 0x794   :  { %2680 = vmatmul.mubr.msk.bf16.vlgmr.msra.gmra.mrb[24].mxu0 %vm240_vm2, %v565_v54  ;;  %2692 = vmatmul.mubr.msk.bf16.vlgmr.msra.gmra.mrb[16].mxu1 %vm240_vm2, %v565_v54  ;;  %v185_v54 = vadd.f32 %v3306_v27, %v3155_v28 }
 0x795   :  { %2696 = vmatpush3.bf16.msra.mxu0 %v3170_v35  ;;  %2708 = vmatpush3.bf16.msra.mxu1 %v3216_v46 }
 0x796   :  { %2697 = vmatprep.subr.bf16.mxu0 %v3083_v3  ;;  %2709 = vmatprep.subr.bf16.mxu1 %v3083_v3 }
 0x797   :  { %2703 = vmatprep.mubr.msk.bf16.mxu0 %vm3084_vm1, %v3083_v3  ;;  %2715 = vmatprep.mubr.msk.bf16.mxu1 %vm3084_vm1, %v3083_v3 }
 0x799   :  { %2698 = vmatpush3.bf16.msra.mxu0 %v3180_v36  ;;  %2710 = vmatpush3.bf16.msra.mxu1 %v3223_v48 }
 0x79a   :  { %2699 = vmatprep.subr.bf16.mxu0 %v3083_v3  ;;  %2711 = vmatprep.subr.bf16.mxu1 %v3083_v3 }
 0x79d   :  { %2700 = vmatpush3.bf16.msra.mxu0 %v3189_v37  ;;  %2712 = vmatpush3.bf16.msra.mxu1 %v3232_v49 }
 0x79e   :  { %2701 = vmatprep.subr.bf16.mxu0 %v3083_v3  ;;  %2713 = vmatprep.subr.bf16.mxu1 %v3083_v3 }
 0x7a1   :  { %2702 = vmatpush3.bf16.msra.mxu0 %v3199_v39  ;;  %2714 = vmatpush3.bf16.msra.mxu1 %v3239_v50 }
 0x7a2   :  { %2719 = vmatprep.subr.bf16.mxu0 %v3083_v3  ;;  %2731 = vmatprep.subr.bf16.mxu1 %v3083_v3 }
 0x867   :  { %v603_v55 = vpop.f32.mrb[24].mxu0  ;;  %v648_v56 = vpop.f32.mrb[16].mxu1 }
 0x868   :  { %v609_v57 = vadd.f32 %v603_v55, %v177_v23  ;;  %v2681_v58 = vpop.f32.mrb[25].mxu0  ;;  %v2693_v59 = vpop.f32.mrb[17].mxu1  ;;  %v649_v6 = vadd.f32 %v648_v56, %v3160_v29 }
 0x869   :  { %v606_v60 = vpop.f32.mrb[26].mxu0  ;;  %v651_v61 = vpop.f32.mrb[18].mxu1 }
 0x86a   :  { %v610_v62 = vmul.f32 0.5, %v609_v57  ;;  %v2682_v63 = vpop.f32.mrb[27].mxu0  ;;  %v2694_v0 = vpop.f32.mrb[19].mxu1 }
 0x86c   :  { %3031 = vtanh.f32 %v610_v62 }
 0x876   :  { %v3032_v1 = vpop.eup %3031 }
 0x877   :  { %v612_v2 = vmul.f32 0.5, %v3032_v1 }
 0x879   :  { %v613_v5 = vadd.f32 0.5, %v612_v2 }
 0x87b   :  { %v654_v24 = vmul.f32 %v649_v6, %v613_v5  ;;  %v657_v10 = vsub.f32 1.0, %v613_v5  ;;  %v663_v12 = vmul.f32 %v613_v5, %v3377_v52 }
 0x87d   :  { %v655_v8 = vadd.f32 %v654_v24, %v179_v7  ;;  %v191_v7 = vadd.f32 %v3310_v31, %v3155_v28 }
 0x87f   :  { %3033 = vtanh.f32 %v655_v8 }
 0x889   :  { %v3034_v9 = vpop.eup %3033 }
 0x88a   :  { %659 = vrot.lane.b32.xlu0 %v3034_v9, %s3085_s19  ;;  %v975_v9 = vld [vmem:[%s3926_s1 + $0x58] sm:$0xff] }
 0x8fc   :  { %v660_v11 = vpop.permute.xlu0 %659 }
 0x8fd   :  { %v662_v13 = vmul.f32 %v660_v11, %v657_v10  ;;  %v977_v10 = vld [vmem:[%s3926_s1 + $0x68] sm:$0xff] }
 0x8fe   :  { %v2931_v11 = vpack.c.bf16 %v977_v10, %v975_v9 }
 0x8ff   :  { %v3411_v14 = vadd.f32 %v663_v12, %v662_v13 }
 0x901   :  { %v665_v15 = vpack.c.bf16 %v3411_v14, %v3411_v14 }
 0x903   :  { %667 = vrot.lane.b32.xlu1 %v665_v15, %s3085_s19 }
 0x975   :  { %v668_v16 = vpop.permute.xlu1 %667 }
 0x976   :  { %2704 = vmatmul.mubr.msk.bf16.vlgmr.msra.gmra.mrb[28].mxu0 %vm240_vm2, %v668_v16  ;;  %2716 = vmatmul.mubr.msk.bf16.vlgmr.msra.gmra.mrb[20].mxu1 %vm240_vm2, %v668_v16 }
 0x977   :  { %2720 = vmatpush3.bf16.msra.mxu0 %v3170_v35  ;;  %2732 = vmatpush3.bf16.msra.mxu1 %v3216_v46 }
 0x978   :  { %2721 = vmatprep.subr.bf16.mxu0 %v3083_v3  ;;  %2733 = vmatprep.subr.bf16.mxu1 %v3083_v3 }
 0x979   :  { %2727 = vmatprep.mubr.msk.bf16.mxu0 %vm3084_vm1, %v3083_v3  ;;  %2739 = vmatprep.mubr.msk.bf16.mxu1 %vm3084_vm1, %v3083_v3 }
 0x97b   :  { %2722 = vmatpush3.bf16.msra.mxu0 %v3180_v36  ;;  %2734 = vmatpush3.bf16.msra.mxu1 %v3223_v48 }
 0x97c   :  { %2723 = vmatprep.subr.bf16.mxu0 %v3083_v3  ;;  %2735 = vmatprep.subr.bf16.mxu1 %v3083_v3 }
 0x97f   :  { %2724 = vmatpush3.bf16.msra.mxu0 %v3189_v37  ;;  %2736 = vmatpush3.bf16.msra.mxu1 %v3232_v49 }
 0x980   :  { %2725 = vmatprep.subr.bf16.mxu0 %v3083_v3  ;;  %2737 = vmatprep.subr.bf16.mxu1 %v3083_v3 }
 0x983   :  { %2726 = vmatpush3.bf16.msra.mxu0 %v3199_v39  ;;  %2738 = vmatpush3.bf16.msra.mxu1 %v3239_v50 }
 0x984   :  { %2743 = vmatprep.subr.bf16.mxu0 %v3083_v3  ;;  %2755 = vmatprep.subr.bf16.mxu1 %v3083_v3 }
 0xa49   :  { %v706_v18 = vpop.f32.mrb[28].mxu0  ;;  %v751_v19 = vpop.f32.mrb[20].mxu1 }
 0xa4a   :  { %v712_v21 = vadd.f32 %v706_v18, %v183_v25  ;;  %v2705_v34 = vpop.f32.mrb[29].mxu0  ;;  %v2717_v38 = vpop.f32.mrb[21].mxu1  ;;  %v752_v53 = vadd.f32 %v751_v19, %v3160_v29  ;;  %v974_v18 = vld [vmem:[%s3926_s1 + $0x50] sm:$0xff]  ;;  %v976_v19 = vld [vmem:[%s3926_s1 + $0x60] sm:$0xff] }
 0xa4b   :  { %v709_v40 = vpop.f32.mrb[30].mxu0  ;;  %v754_v22 = vpop.f32.mrb[22].mxu1  ;;  %v978_v38 = vld [vmem:[%s3926_s1 + $0x70] sm:$0xff] }
 0xa4c   :  { %v713_v41 = vmul.f32 0.5, %v712_v21  ;;  %v2706_v43 = vpop.f32.mrb[31].mxu0  ;;  %v2718_v44 = vpop.f32.mrb[23].mxu1  ;;  %v979_v21 = vld [vmem:[%s3926_s1 + $0x78] sm:$0xff]  ;;  %v980_v40 = vld [vmem:[%s3926_s1 + $0x80] sm:$0xff] }
 0xa4d   :  { %v985_v43 = vld [vmem:[%s3926_s1 + $0xa8] sm:$0xff]  ;;  %v2937_v44 = vpack.c.bf16 %v980_v40, %v978_v38 }
 0xa4e   :  { %3035 = vtanh.f32 %v713_v41  ;;  %v983_v41 = vld [vmem:[%s3926_s1 + $0x98] sm:$0xff] }
 0xa58   :  { %v3036_v45 = vpop.eup %3035 }
 0xa59   :  { %v715_v47 = vmul.f32 0.5, %v3036_v45  ;;  %v2939_v45 = vpack.c.bf16 %v985_v43, %v983_v41  ;;  %v3613_v43 = vld [vmem:[%s3926_s1 + $0x111] ss:$0 sm:$0xff] }
 0xa5b   :  { %v716_v51 = vadd.f32 0.5, %v715_v47  ;;  %v982_v47 = vld [vmem:[%s3926_s1 + $0x90] sm:$0xff] }
 0xa5d   :  { %v757_v26 = vmul.f32 %v752_v53, %v716_v51  ;;  %v760_v56 = vsub.f32 1.0, %v716_v51  ;;  %v766_v58 = vmul.f32 %v716_v51, %v3411_v14  ;;  %v984_v51 = vld [vmem:[%s3926_s1 + $0xa0] sm:$0xff]  ;;  %v987_v53 = vld [vmem:[%s3926_s1 + $0xb8] sm:$0xff] }
 0xa5f   :  { %v758_v23 = vadd.f32 %v757_v26, %v185_v54  ;;  %v989_v54 = vld [vmem:[%s3926_s1 + $0xc8] sm:$0xff]  ;;  %v2941_v26 = vpack.c.bf16 %v984_v51, %v982_v47 }
 0xa61   :  { %3037 = vtanh.f32 %v758_v23  ;;  %v2943_v23 = vpack.c.bf16 %v989_v54, %v987_v53 }
 0xa6b   :  { %v3038_v55 = vpop.eup %3037 }
 0xa6c   :  { %762 = vrot.lane.b32.xlu0 %v3038_v55, %s3085_s19  ;;  %v986_v55 = vld [vmem:[%s3926_s1 + $0xb0] sm:$0xff] }
 0xade   :  { %v763_v57 = vpop.permute.xlu0 %762 }
 0xadf   :  { %v765_v59 = vmul.f32 %v763_v57, %v760_v56  ;;  %v988_v56 = vld [vmem:[%s3926_s1 + $0xc0] sm:$0xff] }
 0xae0   :  { %v2945_v57 = vpack.c.bf16 %v988_v56, %v986_v55  ;;  %v3628_v56 = vld [vmem:[%s3928_s2 + $0x40] ss:$8 sps:$4 sm:$0xff]  }
 0xae1   :  { %v3445_v60 = vadd.f32 %v766_v58, %v765_v59  ;;  %v195_v59 = vadd.f32 %v3312_v32, %v3152_v20  ;;  %v197_v32 = vadd.f32 %v3314_v33, %v3155_v28 }
 0xae3   :  { %v768_v61 = vpack.c.bf16 %v3445_v60, %v3445_v60 }
 0xae5   :  { %770 = vrot.lane.b32.xlu1 %v768_v61, %s3085_s19 }
 0xb57   :  { %v771_v62 = vpop.permute.xlu1 %770 }
 0xb58   :  { %2728 = vmatmul.mubr.msk.bf16.vlgmr.msra.gmra.mrb[32].mxu0 %vm240_vm2, %v771_v62  ;;  %2740 = vmatmul.mubr.msk.bf16.vlgmr.msra.gmra.mrb[24].mxu1 %vm240_vm2, %v771_v62 }
 0xb59   :  { %2744 = vmatpush3.bf16.msra.mxu0 %v3170_v35  ;;  %2756 = vmatpush3.bf16.msra.mxu1 %v3216_v46  ;;  %v189_v35 = vadd.f32 %v3308_v30, %v3152_v20 }
 0xb5a   :  { %2745 = vmatprep.subr.bf16.mxu0 %v3083_v3  ;;  %2757 = vmatprep.subr.bf16.mxu1 %v3083_v3 }
 0xb5b   :  { %2751 = vmatprep.mubr.msk.bf16.mxu0 %vm3084_vm1, %v3083_v3  ;;  %2763 = vmatprep.mubr.msk.bf16.mxu1 %vm3084_vm1, %v3083_v3 }
 0xb5d   :  { %2746 = vmatpush3.bf16.msra.mxu0 %v3180_v36  ;;  %2758 = vmatpush3.bf16.msra.mxu1 %v3223_v48 }
 0xb5e   :  { %2747 = vmatprep.subr.bf16.mxu0 %v3083_v3  ;;  %2759 = vmatprep.subr.bf16.mxu1 %v3083_v3 }
 0xb61   :  { %2748 = vmatpush3.bf16.msra.mxu0 %v3189_v37  ;;  %2760 = vmatpush3.bf16.msra.mxu1 %v3232_v49 }
 0xb62   :  { %2749 = vmatprep.subr.bf16.mxu0 %v3083_v3  ;;  %2761 = vmatprep.subr.bf16.mxu1 %v3083_v3 }
 0xb65   :  { %2750 = vmatpush3.bf16.msra.mxu0 %v3199_v39  ;;  %2762 = vmatpush3.bf16.msra.mxu1 %v3239_v50 }
 0xb66   :  { %2767 = vmatprep.subr.bf16.mxu1 %v3083_v3  ;;  %2932 = vmatprep.subr.bf16.mxu0 %v2931_v11 }
 0xc2b   :  { %v809_v36 = vpop.f32.mrb[32].mxu0  ;;  %v854_v46 = vpop.f32.mrb[24].mxu1 }
 0xc2c   :  { %v815_v48 = vadd.f32 %v809_v36, %v189_v35  ;;  %v2729_v27 = vpop.f32.mrb[33].mxu0  ;;  %v2741_v37 = vpop.f32.mrb[25].mxu1  ;;  %v855_v50 = vadd.f32 %v854_v46, %v3160_v29 }
 0xc2d   :  { %v812_v63 = vpop.f32.mrb[34].mxu0  ;;  %v857_v49 = vpop.f32.mrb[26].mxu1 }
 0xc2e   :  { %v816_v0 = vmul.f32 0.5, %v815_v48  ;;  %v2730_v1 = vpop.f32.mrb[35].mxu0  ;;  %v2742_v2 = vpop.f32.mrb[27].mxu1 }
 0xc30   :  { %3039 = vtanh.f32 %v816_v0 }
 0xc3a   :  { %v3040_v5 = vpop.eup %3039 }
 0xc3b   :  { %v818_v39 = vmul.f32 0.5, %v3040_v5 }
 0xc3d   :  { %v819_v6 = vadd.f32 0.5, %v818_v39 }
 0xc3f   :  { %v860_v30 = vmul.f32 %v855_v50, %v819_v6  ;;  %v863_v12 = vsub.f32 1.0, %v819_v6  ;;  %v869_v31 = vmul.f32 %v819_v6, %v3445_v60 }
 0xc41   :  { %v861_v24 = vadd.f32 %v860_v30, %v191_v7 }
 0xc43   :  { %3041 = vtanh.f32 %v861_v24 }
 0xc4d   :  { %v3042_v8 = vpop.eup %3041 }
 0xc4e   :  { %865 = vrot.lane.b32.xlu0 %v3042_v8, %s3085_s19 }
 0xcc0   :  { %v866_v13 = vpop.permute.xlu0 %865 }
 0xcc1   :  { %v868_v15 = vmul.f32 %v866_v13, %v863_v12 }
 0xcc3   :  { %v3484_v16 = vadd.f32 %v869_v31, %v868_v15 }
 0xcc5   :  { %v871_v25 = vpack.c.bf16 %v3484_v16, %v3484_v16 }
 0xcc7   :  { %873 = vrot.lane.b32.xlu1 %v871_v25, %s3085_s19 }
 0xccb   :  { %998 = vrot.lane.b32.xlu1 %v3208_v42, %s3085_s19 }
 0xccf   :  { %1002 = vrot.lane.b32.xlu1 %v3343_v4, %s3085_s19  ;;  %v981_v4 = vld [vmem:[%s3926_s1 + $0x88] sm:$0xff] }
 0xcd0   :  { %v2935_v34 = vpack.c.bf16 %v981_v4, %v979_v21 }
 0xcd3   :  { %1006 = vrot.lane.b32.xlu1 %v3411_v14, %s3085_s19  ;;  %v2933_v14 = vpack.c.bf16 %v976_v19, %v974_v18 }
 0xcd7   :  { %1010 = vrot.lane.b32.xlu1 %v3484_v16, %s3085_s19 }
 0xd39   :  { %v874_v22 = vpop.permute.xlu1 %873 }
 0xd3a   :  { %2752 = vmatmul.mubr.msk.bf16.vlgmr.msra.gmra.mrb[36].mxu0 %vm240_vm2, %v874_v22  ;;  %2764 = vmatmul.mubr.msk.bf16.vlgmr.msra.gmra.mrb[28].mxu1 %vm240_vm2, %v874_v22 }
 0xd3b   :  { %2934 = vmatpush1.bf16.msra.mxu0 %v2933_v14  ;;  %1094 = vmatprep.mubr.f32.mxu0 %v3083_v3 }
 0xd3c   :  { %2936 = vmatprep.subr.bf16.mxu0 %v2935_v34  ;;  %2771 = vmatprep.mubr.msk.bf16.mxu1 %vm3084_vm1, %v3083_v3 }
 0xd3d   :  { %v999_v58 = vpop.permute.xlu1 %998  ;;  %2768 = vmatpush3.bf16.msra.mxu1 %v3628_v56 }
 0xd3e   :  { %2769 = vmatprep.subr.bf16.mxu1 %v3083_v3 }
 0xd3f   :  { %2938 = vmatpush1.bf16.msra.mxu0 %v2937_v44 }
 0xd40   :  { %2940 = vmatprep.subr.bf16.mxu0 %v2939_v45 }
 0xd43   :  { %2942 = vmatpush1.bf16.msra.mxu0 %v2941_v26  ;;  %v3621_v26 = vld [vmem:[%s3926_s1 + $0x114] ss:$0 sm:$0xff] }
 0xd44   :  { %2944 = vmatprep.subr.bf16.mxu0 %v2943_v23 }
 0xd47   :  { %2946 = vmatpush1.bf16.msra.mxu0 %v2945_v57 }
 0xd48   :  { %2807 = vmatprep.subr.bf16.mxu0 %v3083_v3 }
 0xd4a   :  { %2439 = vmatmul.mubr.msk.f32.vlgmr.msra.gmra.mrb[40].mxu0 %vm240_vm2, %v999_v58 }
 0xd4b   :  { %1100 = vmatprep.mubr.f32.mxu0 %v3083_v3 }
 0xe0d   :  { %v912_v61 = vpop.f32.mrb[36].mxu0  ;;  %v957_v62 = vpop.f32.mrb[28].mxu1 }
 0xe0e   :  { %v918_v35 = vadd.f32 %v912_v61, %v195_v59  ;;  %v2753_v36 = vpop.f32.mrb[37].mxu0  ;;  %v2765_v46 = vpop.f32.mrb[29].mxu1  ;;  %v958_v20 = vadd.f32 %v957_v62, %v3160_v29  ;;  %v3635_v59 = vld [vmem:[%s3928_s2 + $0x50] ss:$8 sps:$4 sm:$0xff]  }
 0xe0f   :  { %v915_v48 = vpop.f32.mrb[38].mxu0  ;;  %v960_v27 = vpop.f32.mrb[30].mxu1  ;;  %2770 = vmatpush3.bf16.msra.mxu1 %v3635_v59 }
 0xe10   :  { %v919_v37 = vmul.f32 0.5, %v918_v35  ;;  %v2754_v63 = vpop.f32.mrb[39].mxu0  ;;  %v2766_v49 = vpop.f32.mrb[31].mxu1  ;;  %2775 = vmatprep.subr.bf16.mxu1 %v3083_v3 }
 0xe12   :  { %3043 = vtanh.f32 %v919_v37 }
 0xe1c   :  { %v3044_v0 = vpop.eup %3043 }
 0xe1d   :  { %v921_v1 = vmul.f32 0.5, %v3044_v0  ;;  %v3549_v2 = vpop.f32.mrb[40].mxu0 }
 0xe1e   :  { %v3551_v5 = vpop.f32.mrb[41].mxu0 }
 0xe1f   :  { %v922_v39 = vadd.f32 0.5, %v921_v1 }
 0xe21   :  { %v963_v6 = vmul.f32 %v958_v20, %v922_v39  ;;  %v966_v30 = vsub.f32 1.0, %v922_v39  ;;  %v972_v24 = vmul.f32 %v922_v39, %v3484_v16 }
 0xe23   :  { %v964_v50 = vadd.f32 %v963_v6, %v197_v32 }
 0xe25   :  { %3045 = vtanh.f32 %v964_v50 }
 0xe2f   :  { %v3046_v7 = vpop.eup %3045 }
 0xe30   :  { %968 = vrot.lane.b32.xlu0 %v3046_v7, %s3085_s19 }
 0xe34   :  { %1000 = vrot.lane.b32.xlu0 %v3291_v17, %s3085_s19  ;;  %v1003_v17 = vpop.permute.xlu1 %1002 }
 0xe38   :  { %1004 = vrot.lane.b32.xlu0 %v3377_v52, %s3085_s19 }
 0xe3c   :  { %1008 = vrot.lane.b32.xlu0 %v3445_v60, %s3085_s19  ;;  %v1007_v60 = vpop.permute.xlu1 %1006 }
 0xe40   :  { %v1011_v10 = vpop.permute.xlu1 %1010 }
 0xea2   :  { %v969_v29 = vpop.permute.xlu0 %968 }
 0xea3   :  { %v971_v28 = vmul.f32 %v969_v29, %v966_v30 }
 0xea5   :  { %v973_v33 = vadd.f32 %v972_v24, %v971_v28 }
 0xea6   :  { %v1001_v8 = vpop.permute.xlu0 %1000 }
 0xea7   :  { %1012 = vrot.lane.b32.xlu0 %v973_v33, %s3085_s19  ;;  %2440 = vmatmul.mubr.msk.f32.gmra.mrb[42].mxu0 %vm240_vm2, %v1001_v8 }
 0xea8   :  { %1106 = vmatprep.mubr.f32.mxu0 %v3083_v3 }
 0xeaa   :  { %v1005_v52 = vpop.permute.xlu0 %1004 }
 0xeab   :  { %2441 = vmatmul.mubr.msk.f32.gmra.mrb[44].mxu0 %vm240_vm2, %v1003_v17 }
 0xeac   :  { %1112 = vmatprep.mubr.f32.mxu0 %v3083_v3 }
 0xeae   :  { %v1009_v9 = vpop.permute.xlu0 %1008 }
 0xeaf   :  { %2442 = vmatmul.mubr.msk.f32.gmra.mrb[46].mxu0 %vm240_vm2, %v1005_v52 }
 0xeb0   :  { %1118 = vmatprep.mubr.f32.mxu0 %v3083_v3 }
 0xeb3   :  { %2443 = vmatmul.mubr.msk.f32.gmra.mrb[48].mxu0 %vm240_vm2, %v1007_v60 }
 0xeb4   :  { %1124 = vmatprep.mubr.f32.mxu0 %v3083_v3 }
 0xeb7   :  { %2444 = vmatmul.mubr.msk.f32.gmra.mrb[50].mxu0 %vm240_vm2, %v1009_v9 }
 0xeb8   :  { %1130 = vmatprep.mubr.f32.mxu0 %v3083_v3 }
 0xebb   :  { %2445 = vmatmul.mubr.msk.f32.gmra.mrb[52].mxu0 %vm240_vm2, %v1011_v10 }
 0xebc   :  { %1136 = vmatprep.mubr.f32.mxu0 %v3083_v3 }
 0xf19   :  { %v3577_v11 = vpop.permute.xlu0 %1012 }
 0xf1a   :  { %2446 = vmatmul.mubr.msk.f32.gmra.mrb[54].mxu0 %vm240_vm2, %v3577_v11 }
 0xf1b   :  { %2811 = vmatprep.mubr.msk.bf16.mxu0 %vm3084_vm1, %v3083_v3 }
 0xf7a   :  { %v3583_v12 = vpop.f32.mrb[42].mxu0 }
 0xf7b   :  { %v3585_v13 = vpop.f32.mrb[43].mxu0 }
 0xf7e   :  { %v3587_v31 = vpop.f32.mrb[44].mxu0 }
 0xf7f   :  { %v3589_v15 = vpop.f32.mrb[45].mxu0 }
 0xf82   :  { %v3591_v16 = vpop.f32.mrb[46].mxu0 }
 0xf83   :  { %v3593_v25 = vpop.f32.mrb[47].mxu0 }
 0xf86   :  { %v3595_v18 = vpop.f32.mrb[48].mxu0 }
 0xf87   :  { %v3597_v19 = vpop.f32.mrb[49].mxu0 }
 0xf8a   :  { %v3599_v21 = vpop.f32.mrb[50].mxu0 }
 0xf8b   :  { %v3601_v4 = vpop.f32.mrb[51].mxu0 }
 0xf8e   :  { %v3603_v14 = vpop.f32.mrb[52].mxu0 }
 0xf8f   :  { %v1134_v34 = vpop.f32.mrb[53].mxu0 }
 0xfed   :  { %v3605_v38 = vpop.f32.mrb[54].mxu0 }
 0xfee   :  { %1146 = vrot.lane.b32.xlu1 %v3605_v38, %s3086_s22  ;;  %v1140_v40 = vpop.f32.mrb[55].mxu0 }
 0xfef   :  { %1148 = vrot.lane.b32.xlu0 %v1140_v40, %s3086_s22 }
0x1060   :  { %v1147_v22 = vpop.permute.xlu1 %1146 }
0x1061   :  { %v1149_v41 = vpop.permute.xlu0 %1148 }
0x1062   :  { %v1151_v44 = vsel %vm1150_vm3, %v1147_v22, %v1149_v41 }
0x1063   :  { %v1153_v45 = vadd.f32 %v1151_v44, %v3549_v2 }
0x1065   :  { %v1154_v47 = vadd.f32 %v1153_v45, %v3613_v43 }
0x1067   :  { %v1155_v51 = vmul.f32 0.5, %v1154_v47 }
0x1069   :  { %3047 = vtanh.f32 %v1155_v51 }
0x1073   :  { %v3048_v53 = vpop.eup %3047 }
0x1074   :  { %v1157_v54 = vmul.f32 0.5, %v3048_v53 }
0x1076   :  { %v1158_v23 = vadd.f32 0.5, %v1157_v54 }
0x1078   :  { %v1159_v55 = vmul.f32 %v1158_v23, %v3621_v26  ;;  %v1166_v62 = vsub.f32 1.0, %v1158_v23 }
0x107a   :  { %1161 = vrot.lane.b32.xlu1 %v1159_v55, %s3085_s19 }
0x10ec   :  { %v1162_v57 = vpop.permute.xlu1 %1161 }
0x10ed   :  { %v1164_v58 = vadd.f32 %v1162_v57, %v1154_v47 }
0x10ef   :  { %3049 = vtanh.f32 %v1164_v58 }
0x10f9   :  { %v3050_v61 = vpop.eup %3049 }
0x10fa   :  { %1168 = vrot.lane.b32.xlu0 %v3050_v61, %s3087_s4 }
0x10fe   :  { %1246 = vrot.lane.b32.xlu0 %v3628_v56, %s3085_s19 }
0x1102   :  { %1174 = vrot.lane.b32.xlu0 %v3603_v14, %s3086_s22 }
0x116c   :  { %v1169_v35 = vpop.permute.xlu0 %1168 }
0x116d   :  { %v1171_v36 = vmul.f32 %v1169_v35, %v1166_v62 }
0x116f   :  { %v1182_v46 = vpack.c.bf16 %v1171_v36, %v1171_v36 }
0x1170   :  { %v3644_v48 = vpop.permute.xlu0 %1246 }
0x1171   :  { %1184 = vrot.lane.b32.xlu1 %v1182_v46, %s3087_s4  ;;  %2808 = vmatpush3.bf16.msra.mxu0 %v3644_v48 }
0x1172   :  { %2809 = vmatprep.subr.bf16.mxu0 %v3083_v3 }
0x1174   :  { %v1175_v49 = vpop.permute.xlu0 %1174 }
0x1175   :  { %1248 = vrot.lane.b32.xlu1 %v3635_v59, %s3085_s19 }
0x1179   :  { %1176 = vrot.lane.b32.xlu1 %v1134_v34, %s3086_s22 }
0x11e3   :  { %v1185_v27 = vpop.permute.xlu1 %1184 }
0x11e4   :  { %2772 = vmatmul.mubr.msk.bf16.vlgmr.msra.gmra.mrb[32].mxu1 %vm1150_vm3, %v1185_v27 }
0x11e5   :  { %2776 = vmatpush3.bf16.msra.mxu1 %v3644_v48  ;;  %2779 = vmatprep.mubr.msk.bf16.mxu1 %vm3084_vm1, %v3083_v3 }
0x11e6   :  { %2777 = vmatprep.subr.bf16.mxu1 %v3083_v3 }
0x11e7   :  { %v3657_v37 = vpop.permute.xlu1 %1248 }
0x11e8   :  { %2810 = vmatpush3.bf16.msra.mxu0 %v3657_v37 }
0x11e9   :  { %2778 = vmatpush3.bf16.msra.mxu1 %v3657_v37  ;;  %2823 = vmatprep.subr.bf16.mxu0 %v3083_v3 }
0x11ea   :  { %2783 = vmatprep.subr.bf16.mxu1 %v3083_v3 }
0x11eb   :  { %v1177_v63 = vpop.permute.xlu1 %1176 }
0x11ec   :  { %2780 = vmatmul.mubr.msk.bf16.vlgmr.msra.gmra.mrb[36].mxu1 %vm1150_vm3, %v1185_v27  ;;  %v1178_v0 = vsel %vm1150_vm3, %v1175_v49, %v1177_v63 }
0x11ed   :  { %2784 = vmatpush3.bf16.msra.mxu1 %v3628_v56  ;;  %2787 = vmatprep.mubr.msk.bf16.mxu1 %vm3084_vm1, %v3083_v3  ;;  %v1180_v1 = vadd.f32 %v1178_v0, %v3583_v12 }
0x11ee   :  { %2785 = vmatprep.subr.bf16.mxu1 %v3083_v3 }
0x11ef   :  { %v1181_v39 = vadd.f32 %v1180_v1, %v3613_v43 }
0x11f1   :  { %2786 = vmatpush3.bf16.msra.mxu1 %v3635_v59 }
0x11f2   :  { %2791 = vmatprep.subr.bf16.mxu1 %v3083_v3 }
0x12b7   :  { %v1235_v20 = vpop.f32.mrb[32].mxu1 }
0x12b8   :  { %v1241_v32 = vadd.f32 %v1235_v20, %v1181_v39  ;;  %v2773_v6 = vpop.f32.mrb[33].mxu1 }
0x12b9   :  { %v1238_v50 = vpop.f32.mrb[34].mxu1 }
0x12ba   :  { %v1242_v7 = vmul.f32 0.5, %v1241_v32  ;;  %v2774_v30 = vpop.f32.mrb[35].mxu1 }
0x12bc   :  { %3051 = vtanh.f32 %v1242_v7 }
0x12bf   :  { %v1286_v29 = vpop.f32.mrb[36].mxu1 }
0x12c0   :  { %v2781_v24 = vpop.f32.mrb[37].mxu1  ;;  %v1287_v60 = vadd.f32 %v1286_v29, %v3621_v26 }
0x12c1   :  { %v1289_v28 = vpop.f32.mrb[38].mxu1 }
0x12c2   :  { %v2782_v33 = vpop.f32.mrb[39].mxu1 }
0x12c6   :  { %v3052_v8 = vpop.eup %3051 }
0x12c7   :  { %v1244_v17 = vmul.f32 0.5, %v3052_v8 }
0x12c9   :  { %v1245_v52 = vadd.f32 0.5, %v1244_v17 }
0x12cb   :  { %v1292_v9 = vmul.f32 %v1287_v60, %v1245_v52  ;;  %v1299_v22 = vsub.f32 1.0, %v1245_v52  ;;  %v1305_v44 = vmul.f32 %v1245_v52, %v1171_v36 }
0x12cd   :  { %1294 = vrot.lane.b32.xlu0 %v1292_v9, %s3085_s19 }
0x133f   :  { %v1295_v10 = vpop.permute.xlu0 %1294 }
0x1340   :  { %v1297_v34 = vadd.f32 %v1295_v10, %v1181_v39 }
0x1342   :  { %3053 = vtanh.f32 %v1297_v34 }
0x134c   :  { %v3054_v40 = vpop.eup %3053 }
0x134d   :  { %1301 = vrot.lane.b32.xlu1 %v3054_v40, %s3087_s4 }
0x1351   :  { %1309 = vrot.lane.b32.xlu1 %v3599_v21, %s3086_s22 }
0x13bf   :  { %v1302_v41 = vpop.permute.xlu1 %1301 }
0x13c0   :  { %v1304_v45 = vmul.f32 %v1302_v41, %v1299_v22 }
0x13c2   :  { %v1306_v47 = vadd.f32 %v1305_v44, %v1304_v45 }
0x13c3   :  { %v1310_v54 = vpop.permute.xlu1 %1309 }
0x13c4   :  { %v1317_v51 = vpack.c.bf16 %v1306_v47, %v1306_v47 }
0x13c6   :  { %1319 = vrot.lane.b32.xlu0 %v1317_v51, %s3087_s4 }
0x13ca   :  { %1311 = vrot.lane.b32.xlu0 %v3601_v4, %s3086_s22 }
0x1438   :  { %v1320_v53 = vpop.permute.xlu0 %1319 }
0x1439   :  { %2788 = vmatmul.mubr.msk.bf16.vlgmr.msra.gmra.mrb[40].mxu1 %vm1150_vm3, %v1320_v53 }
0x143a   :  { %2792 = vmatpush3.bf16.msra.mxu1 %v3644_v48  ;;  %2795 = vmatprep.mubr.msk.bf16.mxu1 %vm3084_vm1, %v3083_v3 }
0x143b   :  { %2793 = vmatprep.subr.bf16.mxu1 %v3083_v3 }
0x143c   :  { %v1312_v4 = vpop.permute.xlu0 %1311 }
0x143d   :  { %v1313_v23 = vsel %vm1150_vm3, %v1310_v54, %v1312_v4 }
0x143e   :  { %2794 = vmatpush3.bf16.msra.mxu1 %v3657_v37  ;;  %v1315_v55 = vadd.f32 %v1313_v23, %v3587_v31 }
0x143f   :  { %2799 = vmatprep.subr.bf16.mxu1 %v3083_v3 }
0x1440   :  { %v1316_v57 = vadd.f32 %v1315_v55, %v3613_v43 }
0x1441   :  { %2796 = vmatmul.mubr.msk.bf16.vlgmr.msra.gmra.mrb[44].mxu1 %vm1150_vm3, %v1320_v53 }
0x1442   :  { %2800 = vmatpush3.bf16.msra.mxu1 %v3628_v56  ;;  %2803 = vmatprep.mubr.msk.bf16.mxu1 %vm3084_vm1, %v3083_v3 }
0x1443   :  { %2801 = vmatprep.subr.bf16.mxu1 %v3083_v3 }
0x1446   :  { %2802 = vmatpush3.bf16.msra.mxu1 %v3635_v59 }
0x1447   :  { %2815 = vmatprep.subr.bf16.mxu1 %v3083_v3 }
0x150c   :  { %v1358_v58 = vpop.f32.mrb[40].mxu1 }
0x150d   :  { %v1364_v61 = vadd.f32 %v1358_v58, %v1316_v57  ;;  %v2789_v62 = vpop.f32.mrb[41].mxu1 }
0x150e   :  { %v1361_v35 = vpop.f32.mrb[42].mxu1 }
0x150f   :  { %v1365_v36 = vmul.f32 0.5, %v1364_v61  ;;  %v2790_v46 = vpop.f32.mrb[43].mxu1 }
0x1511   :  { %3055 = vtanh.f32 %v1365_v36 }
0x1514   :  { %v1403_v27 = vpop.f32.mrb[44].mxu1 }
0x1515   :  { %v2797_v63 = vpop.f32.mrb[45].mxu1  ;;  %v1404_v32 = vadd.f32 %v1403_v27, %v3621_v26 }
0x1516   :  { %v1406_v49 = vpop.f32.mrb[46].mxu1 }
0x1517   :  { %v2798_v0 = vpop.f32.mrb[47].mxu1 }
0x151b   :  { %v3056_v1 = vpop.eup %3055 }
0x151c   :  { %v1367_v39 = vmul.f32 0.5, %v3056_v1 }
0x151e   :  { %v1368_v20 = vadd.f32 0.5, %v1367_v39 }
0x1520   :  { %v1409_v6 = vmul.f32 %v1404_v32, %v1368_v20  ;;  %v1416_v29 = vsub.f32 1.0, %v1368_v20  ;;  %v1422_v28 = vmul.f32 %v1368_v20, %v1306_v47 }
0x1522   :  { %1411 = vrot.lane.b32.xlu1 %v1409_v6, %s3085_s19 }
0x1594   :  { %v1412_v50 = vpop.permute.xlu1 %1411 }
0x1595   :  { %v1414_v7 = vadd.f32 %v1412_v50, %v1316_v57 }
0x1597   :  { %3057 = vtanh.f32 %v1414_v7 }
0x15a1   :  { %v3058_v30 = vpop.eup %3057 }
0x15a2   :  { %1418 = vrot.lane.b32.xlu0 %v3058_v30, %s3087_s4 }
0x15a6   :  { %1426 = vrot.lane.b32.xlu0 %v3595_v18, %s3086_s22 }
0x1614   :  { %v1419_v24 = vpop.permute.xlu0 %1418 }
0x1615   :  { %v1421_v33 = vmul.f32 %v1419_v24, %v1416_v29 }
0x1617   :  { %v1423_v8 = vadd.f32 %v1422_v28, %v1421_v33 }
0x1618   :  { %v1427_v60 = vpop.permute.xlu0 %1426 }
0x1619   :  { %v1434_v17 = vpack.c.bf16 %v1423_v8, %v1423_v8 }
0x161b   :  { %1436 = vrot.lane.b32.xlu1 %v1434_v17, %s3087_s4 }
0x161f   :  { %1428 = vrot.lane.b32.xlu1 %v3597_v19, %s3086_s22 }
0x168d   :  { %v1437_v52 = vpop.permute.xlu1 %1436 }
0x168e   :  { %2804 = vmatmul.mubr.msk.bf16.vlgmr.msra.gmra.mrb[48].mxu1 %vm1150_vm3, %v1437_v52  ;;  %2812 = vmatmul.mubr.msk.bf16.vlgmr.msra.gmra.mrb[56].mxu0 %vm1150_vm3, %v1437_v52 }
0x168f   :  { %2824 = vmatpush3.bf16.msra.mxu0 %v3644_v48  ;;  %2816 = vmatpush3.bf16.msra.mxu1 %v3628_v56 }
0x1690   :  { %2825 = vmatprep.subr.bf16.mxu0 %v3083_v3  ;;  %2817 = vmatprep.subr.bf16.mxu1 %v3083_v3 }
0x1691   :  { %2819 = vmatprep.mubr.msk.bf16.mxu1 %vm3084_vm1, %v3083_v3  ;;  %2827 = vmatprep.mubr.msk.bf16.mxu0 %vm3084_vm1, %v3083_v3  ;;  %v1429_v19 = vpop.permute.xlu1 %1428 }
0x1692   :  { %v1430_v9 = vsel %vm1150_vm3, %v1427_v60, %v1429_v19 }
0x1693   :  { %2826 = vmatpush3.bf16.msra.mxu0 %v3657_v37  ;;  %2818 = vmatpush3.bf16.msra.mxu1 %v3635_v59  ;;  %v1432_v10 = vadd.f32 %v1430_v9, %v3591_v16 }
0x1694   :  { %2839 = vmatprep.subr.bf16.mxu0 %v3083_v3  ;;  %2831 = vmatprep.subr.bf16.mxu1 %v3083_v3 }
0x1695   :  { %v1433_v34 = vadd.f32 %v1432_v10, %v3613_v43 }
0x1761   :  { %v1475_v40 = vpop.f32.mrb[48].mxu1  ;;  %v1520_v22 = vpop.f32.mrb[56].mxu0 }
0x1762   :  { %v1481_v41 = vadd.f32 %v1475_v40, %v1433_v34  ;;  %v2805_v44 = vpop.f32.mrb[49].mxu1  ;;  %v2813_v45 = vpop.f32.mrb[57].mxu0  ;;  %v1521_v58 = vadd.f32 %v1520_v22, %v3621_v26 }
0x1763   :  { %v1478_v47 = vpop.f32.mrb[50].mxu1  ;;  %v1523_v51 = vpop.f32.mrb[58].mxu0 }
0x1764   :  { %v1482_v53 = vmul.f32 0.5, %v1481_v41  ;;  %v2806_v4 = vpop.f32.mrb[51].mxu1  ;;  %v2814_v54 = vpop.f32.mrb[59].mxu0 }
0x1766   :  { %3059 = vtanh.f32 %v1482_v53 }
0x1770   :  { %v3060_v23 = vpop.eup %3059 }
0x1771   :  { %v1484_v55 = vmul.f32 0.5, %v3060_v23 }
0x1773   :  { %v1485_v57 = vadd.f32 0.5, %v1484_v55 }
0x1775   :  { %v1526_v61 = vmul.f32 %v1521_v58, %v1485_v57  ;;  %v1533_v46 = vsub.f32 1.0, %v1485_v57  ;;  %v1539_v63 = vmul.f32 %v1485_v57, %v1423_v8 }
0x1777   :  { %1528 = vrot.lane.b32.xlu0 %v1526_v61, %s3085_s19 }
0x17e9   :  { %v1529_v62 = vpop.permute.xlu0 %1528 }
0x17ea   :  { %v1531_v35 = vadd.f32 %v1529_v62, %v1433_v34 }
0x17ec   :  { %3061 = vtanh.f32 %v1531_v35 }
0x17f6   :  { %v3062_v36 = vpop.eup %3061 }
0x17f7   :  { %1535 = vrot.lane.b32.xlu1 %v3062_v36, %s3087_s4 }
0x17fb   :  { %1543 = vrot.lane.b32.xlu1 %v3591_v16, %s3086_s22 }
0x1869   :  { %v1536_v27 = vpop.permute.xlu1 %1535 }
0x186a   :  { %v1538_v49 = vmul.f32 %v1536_v27, %v1533_v46 }
0x186c   :  { %v1540_v0 = vadd.f32 %v1539_v63, %v1538_v49 }
0x186e   :  { %v1551_v1 = vpack.c.bf16 %v1540_v0, %v1540_v0 }
0x1870   :  { %1553 = vrot.lane.b32.xlu0 %v1551_v1, %s3087_s4 }
0x1874   :  { %1545 = vrot.lane.b32.xlu0 %v3593_v25, %s3086_s22  ;;  %v1544_v25 = vpop.permute.xlu1 %1543 }
0x18e2   :  { %v1554_v39 = vpop.permute.xlu0 %1553 }
0x18e3   :  { %2820 = vmatmul.mubr.msk.bf16.vlgmr.msra.gmra.mrb[52].mxu1 %vm1150_vm3, %v1554_v39  ;;  %2828 = vmatmul.mubr.msk.bf16.vlgmr.msra.gmra.mrb[60].mxu0 %vm1150_vm3, %v1554_v39 }
0x18e4   :  { %2840 = vmatpush3.bf16.msra.mxu0 %v3644_v48  ;;  %2832 = vmatpush3.bf16.msra.mxu1 %v3628_v56 }
0x18e5   :  { %2841 = vmatprep.subr.bf16.mxu0 %v3083_v3  ;;  %2833 = vmatprep.subr.bf16.mxu1 %v3083_v3 }
0x18e6   :  { %2835 = vmatprep.mubr.msk.bf16.mxu1 %vm3084_vm1, %v3083_v3  ;;  %2843 = vmatprep.mubr.msk.bf16.mxu0 %vm3084_vm1, %v3083_v3  ;;  %v1546_v16 = vpop.permute.xlu0 %1545 }
0x18e7   :  { %v1547_v20 = vsel %vm1150_vm3, %v1544_v25, %v1546_v16 }
0x18e8   :  { %2842 = vmatpush3.bf16.msra.mxu0 %v3657_v37  ;;  %2834 = vmatpush3.bf16.msra.mxu1 %v3635_v59  ;;  %v1549_v32 = vadd.f32 %v1547_v20, %v3595_v18 }
0x18e9   :  { %2855 = vmatprep.subr.bf16.mxu0 %v3083_v3  ;;  %2847 = vmatprep.subr.bf16.mxu1 %v3083_v3 }
0x18ea   :  { %v1550_v6 = vadd.f32 %v1549_v32, %v3613_v43 }
0x19b6   :  { %v1592_v50 = vpop.f32.mrb[52].mxu1  ;;  %v1637_v7 = vpop.f32.mrb[60].mxu0 }
0x19b7   :  { %v1598_v30 = vadd.f32 %v1592_v50, %v1550_v6  ;;  %v2821_v29 = vpop.f32.mrb[53].mxu1  ;;  %v2829_v24 = vpop.f32.mrb[61].mxu0  ;;  %v1638_v10 = vadd.f32 %v1637_v7, %v3621_v26 }
0x19b8   :  { %v1595_v28 = vpop.f32.mrb[54].mxu1  ;;  %v1640_v33 = vpop.f32.mrb[62].mxu0 }
0x19b9   :  { %v1599_v8 = vmul.f32 0.5, %v1598_v30  ;;  %v2822_v17 = vpop.f32.mrb[55].mxu1  ;;  %v2830_v52 = vpop.f32.mrb[63].mxu0 }
0x19bb   :  { %3063 = vtanh.f32 %v1599_v8 }
0x19c5   :  { %v3064_v19 = vpop.eup %3063 }
0x19c6   :  { %v1601_v60 = vmul.f32 0.5, %v3064_v19 }
0x19c8   :  { %v1602_v9 = vadd.f32 0.5, %v1601_v60 }
0x19ca   :  { %v1643_v34 = vmul.f32 %v1638_v10, %v1602_v9  ;;  %v1650_v41 = vsub.f32 1.0, %v1602_v9  ;;  %v1656_v45 = vmul.f32 %v1602_v9, %v1540_v0 }
0x19cc   :  { %1645 = vrot.lane.b32.xlu1 %v1643_v34, %s3085_s19 }
0x1a3e   :  { %v1646_v18 = vpop.permute.xlu1 %1645 }
0x1a3f   :  { %v1648_v40 = vadd.f32 %v1646_v18, %v1550_v6 }
0x1a41   :  { %3065 = vtanh.f32 %v1648_v40 }
0x1a4b   :  { %v3066_v22 = vpop.eup %3065 }
0x1a4c   :  { %1652 = vrot.lane.b32.xlu0 %v3066_v22, %s3087_s4 }
0x1a50   :  { %1660 = vrot.lane.b32.xlu0 %v3587_v31, %s3086_s22 }
0x1abe   :  { %v1653_v44 = vpop.permute.xlu0 %1652 }
0x1abf   :  { %v1655_v47 = vmul.f32 %v1653_v44, %v1650_v41 }
0x1ac1   :  { %v1657_v51 = vadd.f32 %v1656_v45, %v1655_v47  ;;  %v2010_v47 = vld [vmem:[%s3926_s1 + $0xd0] sm:$0xff] }
0x1ac3   :  { %v1668_v53 = vpack.c.bf16 %v1657_v51, %v1657_v51 }
0x1ac5   :  { %1670 = vrot.lane.b32.xlu1 %v1668_v53, %s3087_s4 }
0x1ac9   :  { %1662 = vrot.lane.b32.xlu1 %v3589_v15, %s3086_s22  ;;  %v1661_v15 = vpop.permute.xlu0 %1660 }
0x1b37   :  { %v1671_v4 = vpop.permute.xlu1 %1670 }
0x1b38   :  { %2836 = vmatmul.mubr.msk.bf16.vlgmr.msra.gmra.mrb[56].mxu1 %vm1150_vm3, %v1671_v4  ;;  %2844 = vmatmul.mubr.msk.bf16.vlgmr.msra.gmra.mrb[64].mxu0 %vm1150_vm3, %v1671_v4  ;;  %v2011_v4 = vld [vmem:[%s3926_s1 + $0xe0] sm:$0xff] }
0x1b39   :  { %2856 = vmatpush3.bf16.msra.mxu0 %v3644_v48  ;;  %2848 = vmatpush3.bf16.msra.mxu1 %v3628_v56 }
0x1b3a   :  { %2857 = vmatprep.subr.bf16.mxu0 %v3083_v3  ;;  %2849 = vmatprep.subr.bf16.mxu1 %v3083_v3 }
0x1b3b   :  { %2851 = vmatprep.mubr.msk.bf16.mxu1 %vm3084_vm1, %v3083_v3  ;;  %2859 = vmatprep.mubr.msk.bf16.mxu0 %vm3084_vm1, %v3083_v3  ;;  %v1663_v31 = vpop.permute.xlu1 %1662 }
0x1b3c   :  { %v1664_v54 = vsel %vm1150_vm3, %v1661_v15, %v1663_v31  ;;  %v2015_v31 = vld [vmem:[%s3926_s1 + $0xe8] sm:$0xff] }
0x1b3d   :  { %2858 = vmatpush3.bf16.msra.mxu0 %v3657_v37  ;;  %2850 = vmatpush3.bf16.msra.mxu1 %v3635_v59  ;;  %v1666_v23 = vadd.f32 %v1664_v54, %v3599_v21  ;;  %v2984_v54 = vpack.i.bf16 %v2015_v31, %v2011_v4 }
0x1b3e   :  { %2871 = vmatprep.subr.bf16.mxu0 %v3083_v3  ;;  %2863 = vmatprep.subr.bf16.mxu1 %v3083_v3 }
0x1b3f   :  { %v1667_v55 = vadd.f32 %v1666_v23, %v3613_v43  ;;  %v2012_v23 = vld [vmem:[%s3926_s1 + $0xf0] sm:$0xff] }
0x1c0b   :  { %v1709_v57 = vpop.f32.mrb[56].mxu1  ;;  %v1754_v58 = vpop.f32.mrb[64].mxu0 }
0x1c0c   :  { %v1715_v61 = vadd.f32 %v1709_v57, %v1667_v55  ;;  %v2837_v62 = vpop.f32.mrb[57].mxu1  ;;  %v2845_v35 = vpop.f32.mrb[65].mxu0  ;;  %v1755_v16 = vadd.f32 %v1754_v58, %v3621_v26  ;;  %v3088_v58 = vmov 0.0|0.0  }
0x1c0d   :  { %v1712_v36 = vpop.f32.mrb[58].mxu1  ;;  %v1757_v46 = vpop.f32.mrb[66].mxu0 }
0x1c0e   :  { %v1716_v27 = vmul.f32 0.5, %v1715_v61  ;;  %v2838_v63 = vpop.f32.mrb[59].mxu1  ;;  %v2846_v49 = vpop.f32.mrb[67].mxu0 }
0x1c10   :  { %3067 = vtanh.f32 %v1716_v27  ;;  %v2013_v27 = vld [vmem:[%s3926_s1 + $0x100] sm:$0xff] }
0x1c1a   :  { %v3068_v0 = vpop.eup %3067 }
0x1c1b   :  { %v1718_v1 = vmul.f32 0.5, %v3068_v0 }
0x1c1d   :  { %v1719_v39 = vadd.f32 0.5, %v1718_v1 }
0x1c1f   :  { %v1760_v25 = vmul.f32 %v1755_v16, %v1719_v39  ;;  %v1767_v6 = vsub.f32 1.0, %v1719_v39  ;;  %v1773_v7 = vmul.f32 %v1719_v39, %v1657_v51  ;;  %v2014_v51 = vld [vmem:[%s3926_s1 + $0xd8] sm:$0xff] }
0x1c20   :  { %v2979_v53 = vpack.i.bf16 %v2014_v51, %v2010_v47 }
0x1c21   :  { %1762 = vrot.lane.b32.xlu0 %v1760_v25, %s3085_s19 }
0x1c93   :  { %v1763_v21 = vpop.permute.xlu0 %1762 }
0x1c94   :  { %v1765_v20 = vadd.f32 %v1763_v21, %v1667_v55  ;;  %v2016_v55 = vld [vmem:[%s3926_s1 + $0xf8] sm:$0xff] }
0x1c95   :  { %v2989_v57 = vpack.i.bf16 %v2016_v55, %v2012_v23 }
0x1c96   :  { %3069 = vtanh.f32 %v1765_v20 }
0x1ca0   :  { %v3070_v32 = vpop.eup %3069 }
0x1ca1   :  { %1769 = vrot.lane.b32.xlu1 %v3070_v32, %s3087_s4  ;;  %v2954_v32 = vpack.c.bf16 %v2011_v4, %v2010_v47 }
0x1ca5   :  { %1777 = vrot.lane.b32.xlu1 %v3583_v12, %s3086_s22 }
0x1d13   :  { %v1770_v50 = vpop.permute.xlu1 %1769 }
0x1d14   :  { %v1772_v30 = vmul.f32 %v1770_v50, %v1767_v6 }
0x1d16   :  { %v1774_v29 = vadd.f32 %v1773_v7, %v1772_v30 }
0x1d18   :  { %v1785_v24 = vpack.c.bf16 %v1774_v29, %v1774_v29 }
0x1d1a   :  { %1787 = vrot.lane.b32.xlu0 %v1785_v24, %s3087_s4 }
0x1d1e   :  { %1779 = vrot.lane.b32.xlu0 %v3585_v13, %s3086_s22  ;;  %v1778_v13 = vpop.permute.xlu1 %1777 }
0x1d8c   :  { %v1788_v28 = vpop.permute.xlu0 %1787 }
0x1d8d   :  { %2852 = vmatmul.mubr.msk.bf16.vlgmr.msra.gmra.mrb[60].mxu1 %vm1150_vm3, %v1788_v28  ;;  %2860 = vmatmul.mubr.msk.bf16.vlgmr.msra.gmra.mrb[68].mxu0 %vm1150_vm3, %v1788_v28 }
0x1d8e   :  { %2872 = vmatpush3.bf16.msra.mxu0 %v3644_v48  ;;  %2864 = vmatpush3.bf16.msra.mxu1 %v3628_v56 }
0x1d8f   :  { %2873 = vmatprep.subr.bf16.mxu0 %v3083_v3  ;;  %2865 = vmatprep.subr.bf16.mxu1 %v3083_v3 }
0x1d90   :  { %2867 = vmatprep.mubr.msk.bf16.mxu1 %vm3084_vm1, %v3083_v3  ;;  %2875 = vmatprep.mubr.msk.bf16.mxu0 %vm3084_vm1, %v3083_v3  ;;  %v1780_v12 = vpop.permute.xlu0 %1779 }
0x1d91   :  { %v1781_v48 = vsel %vm1150_vm3, %v1778_v13, %v1780_v12 }
0x1d92   :  { %2874 = vmatpush3.bf16.msra.mxu0 %v3657_v37  ;;  %2866 = vmatpush3.bf16.msra.mxu1 %v3635_v59  ;;  %v1783_v56 = vadd.f32 %v1781_v48, %v3603_v14 }
0x1d93   :  { %2947 = vmatprep.subr.bf16.mxu1 %v3088_v58  ;;  %2953 = vmatprep.subr.bf16.mxu0 %v3088_v58 }
0x1d94   :  { %v1784_v33 = vadd.f32 %v1783_v56, %v3613_v43 }
0x1e60   :  { %v1826_v8 = vpop.f32.mrb[60].mxu1  ;;  %v1871_v17 = vpop.f32.mrb[68].mxu0 }
0x1e61   :  { %v1832_v52 = vadd.f32 %v1826_v8, %v1784_v33  ;;  %v2853_v19 = vpop.f32.mrb[61].mxu1  ;;  %v2861_v60 = vpop.f32.mrb[69].mxu0  ;;  %v1872_v41 = vadd.f32 %v1871_v17, %v3621_v26 }
0x1e62   :  { %v1829_v9 = vpop.f32.mrb[62].mxu1  ;;  %v1874_v10 = vpop.f32.mrb[70].mxu0 }
0x1e63   :  { %v1833_v34 = vmul.f32 0.5, %v1832_v52  ;;  %v2854_v18 = vpop.f32.mrb[63].mxu1  ;;  %v2862_v37 = vpop.f32.mrb[71].mxu0 }
0x1e65   :  { %3071 = vtanh.f32 %v1833_v34 }
0x1e6f   :  { %v3072_v59 = vpop.eup %3071 }
0x1e70   :  { %v1835_v40 = vmul.f32 0.5, %v3072_v59 }
0x1e72   :  { %v1836_v22 = vadd.f32 0.5, %v1835_v40 }
0x1e74   :  { %v1877_v44 = vmul.f32 %v1872_v41, %v1836_v22  ;;  %v1884_v61 = vsub.f32 1.0, %v1836_v22  ;;  %v1890_v35 = vmul.f32 %v1836_v22, %v1774_v29 }
0x1e76   :  { %1879 = vrot.lane.b32.xlu1 %v1877_v44, %s3085_s19 }
0x1e7a   :  { %2980 = vrot.lane.b32.xlu1 %v2979_v53, %s3086_s22 }
0x1ee8   :  { %v1880_v14 = vpop.permute.xlu1 %1879 }
0x1ee9   :  { %v1882_v45 = vadd.f32 %v1880_v14, %v1784_v33  ;;  %v2009_v14 = vld [vmem:[%s3926_s1 + $0x112] ss:$0 sm:$0xff] }
0x1eeb   :  { %3073 = vtanh.f32 %v1882_v45 }
0x1eec   :  { %v2981_v49 = vpop.permute.xlu1 %2980 }
0x1eed   :  { %v2983_v16 = vunpack.i.h.bf16 %v2981_v49  ;;  %v2982_v25 = vunpack.i.l.bf16 %v2981_v49  ;;  %v2231_v49 = vld [vmem:[%s3926_s1 + $0x150] sm:$0xff] }
0x1eef   :  { %v2044_v20 = vsel %vm1150_vm3, %v2982_v25, %v2983_v16  ;;  %v2309_v25 = vld [vmem:[%s3926_s1 + $0x170] sm:$0xff] }
0x1ef5   :  { %v3074_v15 = vpop.eup %3073 }
0x1ef6   :  { %1886 = vrot.lane.b32.xlu0 %v3074_v15, %s3087_s4 }
0x1efa   :  { %2985 = vrot.lane.b32.xlu0 %v2984_v54, %s3086_s22 }
0x1efe   :  { %2990 = vrot.lane.b32.xlu0 %v2989_v57, %s3086_s22  ;;  %v29_v57 = vld [vmem:[%s3926_s1 + $0x115] ss:$0 sm:$0xff] }
0x1f02   :  { %2018 = vrot.lane.b32.xlu0 %v3208_v42, %s3086_s22  ;;  %v2017_v42 = vld [vmem:[%s3926_s1 + $0x108] sm:$0xff] }
0x1f03   :  { %v2994_v63 = vpack.i.bf16 %v2017_v42, %v2013_v27 }
0x1f06   :  { %1896 = vrot.lane.b32.xlu0 %v3551_v5, %s3086_s22 }
0x1f68   :  { %v1887_v62 = vpop.permute.xlu0 %1886 }
0x1f69   :  { %v1889_v36 = vmul.f32 %v1887_v62, %v1884_v61 }
0x1f6b   :  { %v3826_v46 = vadd.f32 %v1890_v35, %v1889_v36 }
0x1f6c   :  { %v2986_v0 = vpop.permute.xlu0 %2985 }
0x1f6d   :  { %v1902_v5 = vpack.c.bf16 %v3826_v46, %v3826_v46  ;;  %v2988_v1 = vunpack.i.h.bf16 %v2986_v0  ;;  %v2987_v39 = vunpack.i.l.bf16 %v2986_v0 }
0x1f6f   :  { %1904 = vrot.lane.b32.xlu1 %v1902_v5, %s3087_s4  ;;  %v2045_v21 = vsel %vm1150_vm3, %v2987_v39, %v2988_v1  ;;  %v2229_v5 = vld [vmem:[%s3926_s1 + $0x130] sm:$0xff]  ;;  %v2232_v1 = vld [vmem:[%s3926_s1 + $0x160] sm:$0xff] }
0x1f70   :  { %v2948_v6 = vpack.c.bf16 %v2045_v21, %v2044_v20  ;;  %v2991_v50 = vpop.permute.xlu0 %2990  ;;  %v2963_v39 = vpack.c.bf16 %v2232_v1, %v2231_v49  ;;  %v2310_v21 = vld [vmem:[%s3926_s1 + $0x180] sm:$0xff]  ;;  %v2311_v20 = vld [vmem:[%s3926_s1 + $0x190] sm:$0xff] }
0x1f71   :  { %v2993_v30 = vunpack.i.h.bf16 %v2991_v50  ;;  %v2992_v29 = vunpack.i.l.bf16 %v2991_v50 }
0x1f73   :  { %2995 = vrot.lane.b32.xlu1 %v2994_v63, %s3086_s22  ;;  %v2046_v28 = vsel %vm1150_vm3, %v2992_v29, %v2993_v30  ;;  %v2230_v63 = vld [vmem:[%s3926_s1 + $0x140] sm:$0xff] }
0x1f74   :  { %v2019_v33 = vpop.permute.xlu0 %2018  ;;  %v2960_v0 = vpack.c.bf16 %v2230_v63, %v2229_v5 }
0x1f77   :  { %1894 = vrot.lane.b32.xlu1 %v3549_v2, %s3086_s22  ;;  %v2957_v2 = vpack.c.bf16 %v2013_v27, %v2012_v23 }
0x1f78   :  { %v1897_v17 = vpop.permute.xlu0 %1896 }
0x1fe1   :  { %v1905_v7 = vpop.permute.xlu1 %1904 }
0x1fe2   :  { %2868 = vmatmul.mubr.msk.bf16.vlgmr.msra.gmra.mrb[64].mxu1 %vm1150_vm3, %v1905_v7  ;;  %2876 = vmatmul.mubr.msk.bf16.vlgmr.msra.gmra.mrb[72].mxu0 %vm1150_vm3, %v1905_v7 }
0x1fe3   :  { %2949 = vmatpush3.bf16.msra.mxu1 %v2948_v6  ;;  %2955 = vmatpush3.bf16.msra.mxu0 %v2954_v32  ;;  %v2966_v32 = vpack.c.bf16 %v2310_v21, %v2309_v25  ;;  %v2312_v6 = vld [vmem:[%s3926_s1 + $0x1a0] sm:$0xff] }
0x1fe4   :  { %2956 = vmatprep.subr.bf16.mxu0 %v3088_v58  ;;  %2898 = vmatprep.mubr.msk.f32.mxu0 %vm3084_vm1, %v3083_v3  ;;  %v2969_v50 = vpack.c.bf16 %v2312_v6, %v2311_v20 }
0x1fe5   :  { %v2996_v24 = vpop.permute.xlu1 %2995  ;;  %2950 = vmatprep.subr.bf16.mxu1 %v3088_v58  ;;  %2887 = vmatprep.mubr.msk.f32.mxu1 %vm3084_vm1, %v3083_v3 }
0x1fe6   :  { %v2998_v12 = vunpack.i.h.bf16 %v2996_v24  ;;  %v2997_v13 = vunpack.i.l.bf16 %v2996_v24 }
0x1fe7   :  { %2958 = vmatpush3.bf16.msra.mxu0 %v2957_v2 }
0x1fe8   :  { %v2047_v48 = vsel %vm1150_vm3, %v2997_v13, %v2998_v12  ;;  %2965 = vmatprep.subr.bf16.mxu0 %v3088_v58  ;;  %v3090_v12 = vmov 38   ;;  %v2214_v13 = vld [vmem:[%s3927_s0] sm:$0xff] }
0x1fe9   :  { %v2951_v56 = vpack.c.bf16 %v2047_v48, %v2046_v28  ;;  %v1895_v8 = vpop.permute.xlu1 %1894  ;;  %v3089_v28 = vmov 39   ;;  %2999 = vset.pattern.permute.xlu1 %v3090_v12 }
0x1fea   :  { %2899 = vmatmul.mubr.msk.f32.vlgmr.msra.gmra.mrb[76].mxu0 %vm1150_vm3, %v3577_v11  ;;  %v1898_v52 = vsel %vm1150_vm3, %v1895_v8, %v1897_v17  ;;  %3000 = vset.pattern.permute.xlu0 %v3089_v28  ;;  %v2215_v17 = vld [vmem:[%s3926_s1 + $0x120] ss:$0 sm:$0xff] }
0x1feb   :  { %2952 = vmatpush3.bf16.msra.mxu1 %v2951_v56  ;;  %2920 = vmatprep.mubr.msk.f32.mxu0 %vm3084_vm1, %v3083_v3  ;;  %v1900_v19 = vadd.f32 %v1898_v52, %v3605_v38  ;;  %v2222_v52 = vld [vmem:[%s3926_s1 + $0x121] ss:$0 sm:$0xff] }
0x1fec   :  { %2959 = vmatprep.subr.bf16.mxu1 %v3088_v58  ;;  %2967 = vmatpush3.bf16.msra.mxu0 %v2966_v32 }
0x1fed   :  { %v1901_v11 = vadd.f32 %v1900_v19, %v3613_v43  ;;  %2968 = vmatprep.subr.bf16.mxu0 %v3088_v58 }
0x1fee   :  { %2888 = vmatmul.mubr.msk.f32.vlgmr.msra.gmra.mrb[68].mxu1 %vm1150_vm3, %v2019_v33 }
0x1fef   :  { %2909 = vmatprep.mubr.msk.f32.mxu1 %vm3084_vm1, %v3083_v3  ;;  %2961 = vmatpush3.bf16.msra.mxu1 %v2960_v0 }
0x1ff0   :  { %2962 = vmatprep.subr.bf16.mxu1 %v3088_v58  ;;  %2970 = vmatpush3.bf16.msra.mxu0 %v2969_v50 }
0x1ff3   :  { %2964 = vmatpush3.bf16.msra.mxu1 %v2963_v39 }
0x20b5   :  { %v1943_v60 = vpop.f32.mrb[64].mxu1  ;;  %v1988_v9 = vpop.f32.mrb[72].mxu0 }
0x20b6   :  { %v1949_v10 = vadd.f32 %v1943_v60, %v1901_v11  ;;  %v2869_v34 = vpop.f32.mrb[65].mxu1  ;;  %v2877_v18 = vpop.f32.mrb[73].mxu0  ;;  %v1989_v15 = vadd.f32 %v1988_v9, %v3621_v26 }
0x20b7   :  { %v1946_v37 = vpop.f32.mrb[66].mxu1  ;;  %v1991_v59 = vpop.f32.mrb[74].mxu0 }
0x20b8   :  { %v1950_v40 = vmul.f32 0.5, %v1949_v10  ;;  %v2870_v22 = vpop.f32.mrb[67].mxu1  ;;  %v2878_v41 = vpop.f32.mrb[75].mxu0  ;;  %v2389_v59 = vld [vmem:[%s3926_s1 + $0x116] ss:$0 sm:$0xff] }
0x20ba   :  { %3075 = vtanh.f32 %v1950_v40 }
0x20bd   :  { %v2192_v3 = vpop.f32.mrb[76].mxu0 }
0x20be   :  { %v2900_v44 = vpop.f32.mrb[77].mxu0 }
0x20c1   :  { %v2120_v38 = vpop.f32.mrb[68].mxu1 }
0x20c2   :  { %v2193_v45 = vadd.f32 %v2192_v3, %v2120_v38  ;;  %v2889_v43 = vpop.f32.mrb[69].mxu1  ;;  %v2392_v3 = vld [vmem:[%s3926_s1 + $0x117] ss:$0 sm:$0xff] }
0x20c4   :  { %v3076_v47 = vpop.eup %3075  ;;  %v2196_v51 = vadd.f32 %v2193_v45, %v2009_v14 }
0x20c5   :  { %v1952_v53 = vmul.f32 0.5, %v3076_v47 }
0x20c6   :  { %v2197_v4 = vmul.f32 0.5, %v2196_v51 }
0x20c7   :  { %v1953_v31 = vadd.f32 0.5, %v1952_v53 }
0x20c8   :  { %3077 = vtanh.f32 %v2197_v4 }
0x20c9   :  { %v1994_v54 = vmul.f32 %v1989_v15, %v1953_v31  ;;  %v2001_v7 = vsub.f32 1.0, %v1953_v31  ;;  %v2007_v29 = vmul.f32 %v1953_v31, %v3826_v46 }
0x20cb   :  { %1996 = vrot.lane.b32.xlu1 %v1994_v54, %s3085_s19 }
0x20d2   :  { %v3078_v23 = vpop.eup %3077 }
0x20d3   :  { %v2199_v55 = vmul.f32 0.5, %v3078_v23 }
0x20d5   :  { %v2200_v61 = vadd.f32 0.5, %v2199_v55 }
0x20d7   :  { %v2201_v62 = vmul.f32 %v2200_v61, %v29_v57  ;;  %v2208_v48 = vsub.f32 1.0, %v2200_v61 }
0x20d9   :  { %2203 = vrot.lane.b32.xlu0 %v2201_v62, %s3085_s19 }
0x213d   :  { %v1997_v35 = vpop.permute.xlu1 %1996 }
0x213e   :  { %v1999_v36 = vadd.f32 %v1997_v35, %v1901_v11 }
0x2140   :  { %3079 = vtanh.f32 %v1999_v36 }
0x214a   :  { %v3080_v27 = vpop.eup %3079 }
0x214b   :  { %2003 = vrot.lane.b32.xlu1 %v3080_v27, %s3087_s4  ;;  %v2204_v26 = vpop.permute.xlu0 %2203 }
0x214c   :  { %v2206_v42 = vadd.f32 %v2204_v26, %v2196_v51 }
0x214e   :  { %3081 = vtanh.f32 %v2206_v42 }
0x2158   :  { %v3082_v16 = vpop.eup %3081 }
0x2159   :  { %2210 = vrot.lane.b32.xlu0 %v3082_v16, %s3087_s4 }
0x21bd   :  { %v2004_v30 = vpop.permute.xlu1 %2003 }
0x21be   :  { %v2006_v2 = vmul.f32 %v2004_v30, %v2001_v7 }
0x21c0   :  { %v2008_v24 = vadd.f32 %v2007_v29, %v2006_v2 }
0x21c2   :  { %2234 = vrot.lane.b32.xlu1 %v2008_v24, %s3087_s4 }
0x21c6   :  { %2218 = vperm.xlu1 %2999, %v2214_v13  }
0x21cb   :  { %v2211_v58 = vpop.permute.xlu0 %2210 }
0x21cc   :  { %v2213_v56 = vmul.f32 %v2211_v58, %v2208_v48 }
0x21ce   :  { %2314 = vrot.lane.b32.xlu0 %v2213_v56, %s3087_s4 }
0x21d2   :  { %2224 = vperm.xlu0 %3000, %v2214_v13  }
0x2234   :  { %v2235_v46 = vpop.permute.xlu1 %2234 }
0x2235   :  { %2910 = vmatmul.mubr.msk.f32.vlgmr.msra.gmra.mrb[70].mxu1 %vm1150_vm3, %v2235_v46 }
0x2240   :  { %v2315_v33 = vpop.permute.xlu0 %2314 }
0x2241   :  { %2921 = vmatmul.mubr.msk.f32.vlgmr.msra.gmra.mrb[78].mxu0 %vm1150_vm3, %v2315_v33 }
0x2245   :  { %v2219_v8 = vpop.permute.xlu1 %2218 }
0x2246   :  { %v2221_v9 = vmul.f32 %v2219_v8, %v2215_v17 }
0x2251   :  { %v2225_v19 = vpop.permute.xlu0 %2224 }
0x2252   :  { %v2227_v10 = vmul.f32 %v2225_v19, %v2222_v52 }
0x2254   :  { %v2228_v34 = vadd.f32 %v2227_v10, %v2221_v9 }
0x2308   :  { %v2304_v11 = vpop.f32.mrb[70].mxu1 }
0x2309   :  { %v2911_v60 = vpop.f32.mrb[71].mxu1  ;;  %v2308_v18 = vadd.f32 %v2304_v11, %v2228_v34 }
0x2314   :  { %v2384_v37 = vpop.f32.mrb[78].mxu0 }
0x2315   :  { %v2388_v40 = vadd.f32 %v2384_v37, %v2308_v18  ;;  %v2922_v22 = vpop.f32.mrb[79].mxu0 }
0x2317   :  { %v2390_v41 = vadd.f32 %v2389_v59, %v2388_v40 }
0x2319   :  { %v2391_v44 = vmax.f32 %v2390_v41, 0.0 }
0x231b   :  { %v2393_v14 = vmul.f32 %v2392_v3, %v2391_v44 }
0x231d   :  { %v2394_v38 = vsel %vm240_vm2, %v2393_v14, 0.0 }
0x231e   :  { %2395 = vadd.xlane.f32.xlu1 %v2394_v38 }
0x23ab   :  { %v2396_v45 = vpop.xlane.xlu1 %2395 }
0x23ac   :  { %v2397_v43 = vadd.f32 %v2396_v45, %v2392_v3 }
0x23ae   :  { %2399 = vrot.lane.b32.xlu0 %v2397_v43, %s3085_s19 }
0x2420   :  { %v2400_v47 = vpop.permute.xlu0 %2399 }
0x2421   :  { %2403 = vst.msk [vmem:[%s3929_s3] sm:$0xff] %vm2402_vm4, %v2400_v47 }

</bundles_post_ra>
